<compile_context>
chip_gen: v6e
topology: v6e:2x2x1
jax: 0.10.0
libtpu: 0.0.40
codegen_flags: <defaults>
</compile_context>

<pallas_src>
import functools

import jax
import jax.numpy as jnp
import numpy as np
from jax.experimental import pallas as pl
from jax.experimental.pallas import tpu as pltpu

NEG_SLOPE = 0.2  # GATConv default negative_slope


# ----------------------------------------------------------------------------
# Generation-aware knobs (v5e/v6e: 128 MiB VMEM, v7x: 64 MiB).
# ----------------------------------------------------------------------------
def _vmem_limit_bytes():
    default_phys = 64 * 1024 * 1024
    try:
        phys = int(getattr(pltpu.get_tpu_info(), "vmem_capacity_bytes",
                           default_phys))
    except Exception:
        phys = default_phys
    if phys <= 0:
        phys = default_phys
    # 96 MiB on 128 MiB parts (v5e/v6e), 48 MiB on 64 MiB parts (v7x).
    return int(min(96 * 1024 * 1024, (3 * phys) // 4))


_COMPILER_PARAMS = pltpu.CompilerParams(
    dimension_semantics=("parallel",),
    vmem_limit_bytes=_vmem_limit_bytes(),
)


def _probe_kernel(x_ref, o_ref):
    o_ref[...] = x_ref[...] * 2.0


def _probe_resident_mode():
    """Check that pipeline_mode=pl.Buffered(1) (single-buffered grid-invariant
    operands) lowers on this Pallas build; fall back to default double
    buffering otherwise."""
    try:
        out = pl.pallas_call(
            _probe_kernel,
            out_shape=jax.ShapeDtypeStruct((16, 128), jnp.float32),
            grid=(2,),
            in_specs=[pl.BlockSpec((8, 128), lambda i: (0, 0),
                                   pipeline_mode=pl.Buffered(1))],
            out_specs=pl.BlockSpec((8, 128), lambda i: (i, 0)),
        )(jnp.ones((8, 128), jnp.float32))
        jax.block_until_ready(out)
        return pl.Buffered(1)
    except Exception:
        return None


_RESIDENT = _probe_resident_mode()   # probed eagerly (outside jit) at import


def _block_spec(shape, index_map, resident=False):
    if resident and _RESIDENT is not None:
        return pl.BlockSpec(shape, index_map, pipeline_mode=_RESIDENT)
    return pl.BlockSpec(shape, index_map)


def _row_tile(n):
    """Largest row tile (multiple of 32, for int8 mask sublane packing) that
    gives >= 4 grid steps (>= 2 per TensorCore on v7x megacore); else full."""
    for t in (256, 128, 64, 32):
        if n % t == 0 and n // t >= 4:
            return t
    return n


# ----------------------------------------------------------------------------
# Kernel A: feature projection  h = x @ W, plus per-node attention scalars
#   s_i = <h_i, att_src>,  d_i = <h_i, att_dst>
# ----------------------------------------------------------------------------
def _gat_proj_kernel(x_ref, w_ref, asrc_ref, adst_ref, h_ref, s_ref, d_ref):
    h = jnp.dot(x_ref[...], w_ref[...], preferred_element_type=jnp.float32)
    h_ref[...] = h.astype(h_ref.dtype)                      # bf16 for the attn matmul
    s_ref[...] = jnp.sum(h * asrc_ref[...], axis=-1, keepdims=True)
    d_ref[...] = jnp.sum(h * adst_ref[...], axis=-1, keepdims=True)


def gat_project(x_bf16, w_bf16, att_src, att_dst):
    n, f_in = x_bf16.shape
    f_out = w_bf16.shape[1]
    tm = _row_tile(n)
    cost = pl.CostEstimate(
        flops=2 * n * f_in * f_out + 4 * n * f_out,
        transcendentals=0,
        bytes_accessed=2 * (n * f_in + f_in * f_out) + 2 * n * f_out
        + 8 * n + 16 * f_out,
    )
    return pl.pallas_call(
        _gat_proj_kernel,
        out_shape=(
            jax.ShapeDtypeStruct((n, f_out), jnp.bfloat16),   # h (bf16)
            jax.ShapeDtypeStruct((n, 1), jnp.float32),        # alpha_src per node
            jax.ShapeDtypeStruct((n, 1), jnp.float32),        # alpha_dst per node
        ),
        grid=(n // tm,),
        in_specs=[
            _block_spec((tm, f_in), lambda i: (i, 0)),                  # x tile (bf16)
            _block_spec((f_in, f_out), lambda i: (0, 0), resident=True),  # W
            _block_spec((1, f_out), lambda i: (0, 0), resident=True),     # att_src
            _block_spec((1, f_out), lambda i: (0, 0), resident=True),     # att_dst
        ],
        out_specs=(
            pl.BlockSpec((tm, f_out), lambda i: (i, 0)),
            pl.BlockSpec((tm, 1), lambda i: (i, 0)),
            pl.BlockSpec((tm, 1), lambda i: (i, 0)),
        ),
        compiler_params=_COMPILER_PARAMS,
        cost_estimate=cost,
    )(x_bf16, w_bf16, att_src.reshape(1, f_out), att_dst.reshape(1, f_out))


# ----------------------------------------------------------------------------
# Kernel B: masked edge-softmax attention + aggregation (+ bias, optional ReLU)
#   logits[i, j] = LeakyReLU(d_i + s_j), masked to existing edges,
#   out          = softmax(logits) @ h + bias
# ----------------------------------------------------------------------------
def _gat_attn_kernel(mask_ref, adst_ref, asrc_ref, h_ref, b_ref, o_ref,
                     *, neg_slope, apply_relu):
    logits = adst_ref[...] + asrc_ref[...]                    # (tm,1)+(1,N)->(tm,N)
    logits = jnp.maximum(logits, neg_slope * logits)          # LeakyReLU (slope<1)
    logits = jnp.where(mask_ref[...] != 0, logits, -1e30)     # int8 mask compare (VPU)
    m = jnp.max(logits, axis=-1, keepdims=True)
    p = jnp.exp(logits - m)
    denom = jnp.sum(p, axis=-1, keepdims=True)
    p = p * pl.reciprocal(denom, approx=True)                 # EUP, ~free
    out = jnp.dot(p.astype(jnp.bfloat16), h_ref[...],         # bf16 MXU, f32 acc
                  preferred_element_type=jnp.float32)
    out = out + b_ref[...]
    if apply_relu:
        out = jnp.maximum(out, 0.0)
    o_ref[...] = out.astype(o_ref.dtype)


def gat_attention(mask_i8, alpha_dst, alpha_src_row, h_bf16, bias, *,
                  apply_relu, out_dtype):
    n = mask_i8.shape[0]
    f_out = h_bf16.shape[1]
    tm = _row_tile(n)
    out_bytes = (2 if out_dtype == jnp.bfloat16 else 4) * n * f_out
    cost = pl.CostEstimate(
        flops=2 * n * n * f_out + 8 * n * n,
        transcendentals=n * n + n,
        bytes_accessed=n * n + 2 * n * f_out + out_bytes + 8 * n + 4 * f_out,
    )
    kern = functools.partial(_gat_attn_kernel, neg_slope=NEG_SLOPE,
                             apply_relu=apply_relu)
    return pl.pallas_call(
        kern,
        out_shape=jax.ShapeDtypeStruct((n, f_out), out_dtype),
        grid=(n // tm,),
        in_specs=[
            _block_spec((tm, n), lambda i: (i, 0)),                        # mask rows, int8
            _block_spec((tm, 1), lambda i: (i, 0)),                        # alpha_dst tile
            _block_spec((1, n), lambda i: (0, 0), resident=True),          # alpha_src row
            _block_spec((n, f_out), lambda i: (0, 0), resident=True),      # full h (bf16)
            _block_spec((1, f_out), lambda i: (0, 0), resident=True),      # bias
        ],
        out_specs=pl.BlockSpec((tm, f_out), lambda i: (i, 0)),
        compiler_params=_COMPILER_PARAMS,
        cost_estimate=cost,
    )(mask_i8, alpha_dst, alpha_src_row, h_bf16, bias.reshape(1, f_out))


# ----------------------------------------------------------------------------
# One GATConv layer = projection kernel + attention kernel
# ----------------------------------------------------------------------------
def gat_conv(x_bf16, mask_i8, layer_params, *, apply_relu, out_dtype):
    w, att_src, att_dst, bias = layer_params
    h_bf16, alpha_src_col, alpha_dst = gat_project(
        x_bf16, w.astype(jnp.bfloat16), att_src, att_dst)
    # (N,1) -> (1,N) relayout of the per-src attention scalars stays in XLA:
    # a direct (1, tm) row out-block in the projection kernel would violate the
    # (8,128) block rule whenever tm < 128 (e.g. tm=64 here).  O(N), cheap.
    alpha_src_row = alpha_src_col.reshape(1, -1)
    return gat_attention(mask_i8, alpha_dst, alpha_src_row, h_bf16, bias,
                         apply_relu=apply_relu, out_dtype=out_dtype)


# ----------------------------------------------------------------------------
# GAT.forward (mirrors the PyTorch module)
# ----------------------------------------------------------------------------
@functools.partial(jax.jit, static_argnames=("num_layers",))
def gat_forward(x, mask, params, *, num_layers):
    # int8 adjacency: halves (vs bf16) / quarters (vs f32) the dominant N^2
    # HBM stream of the attention kernel on all generations.
    mask_i8 = (mask > 0).astype(jnp.int8)
    # bf16 operands for the MXU (f32 accumulation inside the kernels); the
    # inter-layer activation also stays bf16 to halve its HBM round trip.
    x = x.astype(jnp.bfloat16)
    out = []
    for i in range(num_layers - 1):
        x = gat_conv(x, mask_i8, params[i], apply_relu=True,
                     out_dtype=jnp.bfloat16)                   # ReLU fused
        out.append(x)
    logits = gat_conv(x, mask_i8, params[num_layers - 1], apply_relu=False,
                      out_dtype=jnp.float32)
    return logits, out


# ----------------------------------------------------------------------------
# Glue: params + dense adjacency (GATConv adds self-loops by default)
# ----------------------------------------------------------------------------
def init_gat_params(key, in_channels, hidden_channels, out_channels, num_layers):
    dims = [(in_channels, hidden_channels)]
    for _ in range(num_layers - 2):
        dims.append((hidden_channels, hidden_channels))
    dims.append((hidden_channels, out_channels))
    params = []
    keys = jax.random.split(key, num_layers)
    for k, (fi, fo) in zip(keys, dims):
        kw, ks, kd, kb = jax.random.split(k, 4)
        sw = 1.0 / np.sqrt(fi)
        sa = 1.0 / np.sqrt(fo)
        w = jax.random.uniform(kw, (fi, fo), jnp.float32, -sw, sw)
        att_src = jax.random.uniform(ks, (fo,), jnp.float32, -sa, sa)
        att_dst = jax.random.uniform(kd, (fo,), jnp.float32, -sa, sa)
        bias = jax.random.uniform(kb, (fo,), jnp.float32, -0.1, 0.1)
        params.append((w, att_src, att_dst, bias))
    return params


def densify_edges(edge_index, num_nodes):
    # TODO(synk): dense [N,N] mask is the scatter/softmax surrogate; real sparse
    # graphs should use CSR + scalar-prefetch gather instead.
    src, dst = edge_index[0], edge_index[1]
    mask = jnp.zeros((num_nodes, num_nodes), jnp.float32)
    mask = mask.at[dst, src].set(1.0)
    idx = jnp.arange(num_nodes)
    mask = mask.at[idx, idx].set(1.0)      # self-loops (GATConv default)
    return mask


# ----------------------------------------------------------------------------
# Pure-JAX reference (f32) for correctness checking
# ----------------------------------------------------------------------------
def gat_forward_ref(x, mask, params, num_layers):
    x = x.astype(jnp.float32)
    out = []
    for i in range(num_layers):
        w, att_src, att_dst, bias = params[i]
        h = x @ w
        s = h @ att_src
        d = h @ att_dst
        logits = d[:, None] + s[None, :]
        logits = jnp.where(logits >= 0.0, logits, NEG_SLOPE * logits)
        logits = jnp.where(mask > 0, logits, -jnp.inf)
        p = jax.nn.softmax(logits, axis=-1)
        x = p @ h + bias
        if i < num_layers - 1:
            x = jax.nn.relu(x)
            out.append(x)
    return x, out


# ----------------------------------------------------------------------------
if __name__ == "__main__":
    key = jax.random.PRNGKey(0)
    k_x, k_e, k_p = jax.random.split(key, 3)

    N = 256              # nodes
    IN_CHANNELS = 32
    HIDDEN = 128         # lane-dense (multiple of 128)
    OUT_CHANNELS = 128
    NUM_LAYERS = 3
    E = 2048             # random directed edges

    x = jax.random.normal(k_x, (N, IN_CHANNELS), jnp.float32)
    edge_index = jax.random.randint(k_e, (2, E), 0, N, jnp.int32)
    mask = densify_edges(edge_index, N)
    params = init_gat_params(k_p, IN_CHANNELS, HIDDEN, OUT_CHANNELS, NUM_LAYERS)

    logits, hidden_list = gat_forward(x, mask, params, num_layers=NUM_LAYERS)
    jax.block_until_ready((logits, hidden_list))

    assert logits.shape == (N, OUT_CHANNELS)
    assert len(hidden_list) == NUM_LAYERS - 1
    assert all(h.shape == (N, HIDDEN) for h in hidden_list)

    ref_logits, ref_hidden = gat_forward_ref(x, mask, params, NUM_LAYERS)
    np.testing.assert_allclose(np.asarray(logits).astype(np.float32),
                               np.asarray(ref_logits).astype(np.float32),
                               atol=5e-2, rtol=5e-2)
    for h, hr in zip(hidden_list, ref_hidden):
        np.testing.assert_allclose(np.asarray(h).astype(np.float32),
                                   np.asarray(hr).astype(np.float32),
                                   atol=5e-2, rtol=5e-2)

    print("KERNEL_OK")
</pallas_src>

<mosaic_0001>
module attributes {stable_mosaic.version = 11 : i64} {
  func.func @_probe_kernel(%arg0: i32, %arg1: memref<8x128xf32, #tpu.memory_space<vmem>>, %arg2: memref<8x128xf32, #tpu.memory_space<vmem>>) attributes {dimension_semantics = [#tpu.dimension_semantics<arbitrary>], iteration_bounds = array<i64: 2>, scalar_prefetch = 0 : i64, scratch_operands = 0 : i64, tpu.core_type = #tpu.core_type<tc>, window_params = [{pipeline_mode = #tpu.pipeline_mode<synchronous>, transform_indices = @transform_0, window_bounds = array<i64: 8, 128>}, {transform_indices = @transform_1, window_bounds = array<i64: 8, 128>}]} {
    %c0 = arith.constant 0 : index
    %c0_0 = arith.constant 0 : index
    %0 = vector.load %arg1[%c0, %c0_0] : memref<8x128xf32, #tpu.memory_space<vmem>>, vector<8x128xf32>
    %cst = arith.constant 2.000000e+00 : f32
    %1 = vector.broadcast %cst : f32 to vector<8x128xf32>
    %2 = arith.mulf %0, %1 : vector<8x128xf32>
    %c0_1 = arith.constant 0 : index
    %c0_2 = arith.constant 0 : index
    %3 = vector.load %arg2[%c0_1, %c0_2] : memref<8x128xf32, #tpu.memory_space<vmem>>, vector<8x128xf32>
    tpu.vector_store %arg2[%c0_1, %c0_2], %2 {strides = array<i32>} : memref<8x128xf32, #tpu.memory_space<vmem>>, vector<8x128xf32>,
    return
  }
  func.func @transform_0(%arg0: i32) -> (i32, i32) {
    %c0_i32 = arith.constant 0 : i32
    %c0_i32_0 = arith.constant 0 : i32
    %c0_i32_1 = arith.constant 0 : i32
    return %c0_i32, %c0_i32_0 : i32, i32
  }
  func.func @transform_1(%arg0: i32) -> (i32, i32) {
    %c0_i32 = arith.constant 0 : i32
    %c0_i32_0 = arith.constant 0 : i32
    return %arg0, %c0_i32 : i32, i32
  }
}

module attributes {stable_mosaic.version = 11 : i64} {
  func.func @_gat_attn_kernel(%arg0: i32, %arg1: memref<64x256xi8, #tpu.memory_space<vmem>>, %arg2: memref<64x1xf32, #tpu.memory_space<vmem>>, %arg3: memref<1x256xf32, #tpu.memory_space<vmem>>, %arg4: memref<256x128xbf16, #tpu.memory_space<vmem>>, %arg5: memref<1x128xf32, #tpu.memory_space<vmem>>, %arg6: memref<64x128xf32, #tpu.memory_space<vmem>>) attributes {dimension_semantics = [#tpu.dimension_semantics<parallel>], iteration_bounds = array<i64: 4>, scalar_prefetch = 0 : i64, scratch_operands = 0 : i64, tpu.core_type = #tpu.core_type<tc>, window_params = [{transform_indices = @transform_0, window_bounds = array<i64: 64, 256>}, {transform_indices = @transform_1, window_bounds = array<i64: 64, 1>}, {pipeline_mode = #tpu.pipeline_mode<synchronous>, transform_indices = @transform_2, window_bounds = array<i64: 1, 256>}, {pipeline_mode = #tpu.pipeline_mode<synchronous>, transform_indices = @transform_3, window_bounds = array<i64: 256, 128>}, {pipeline_mode = #tpu.pipeline_mode<synchronous>, transform_indices = @transform_4, window_bounds = array<i64: 1, 128>}, {transform_indices = @transform_5, window_bounds = array<i64: 64, 128>}]} {
    %c0 = arith.constant 0 : index
    %c0_0 = arith.constant 0 : index
    %0 = vector.load %arg2[%c0, %c0_0] : memref<64x1xf32, #tpu.memory_space<vmem>>, vector<64x1xf32>
    %c0_1 = arith.constant 0 : index
    %c0_2 = arith.constant 0 : index
    %1 = vector.load %arg3[%c0_1, %c0_2] : memref<1x256xf32, #tpu.memory_space<vmem>>, vector<1x256xf32>
    %2 = vector.broadcast %0 : vector<64x1xf32> to vector<64x256xf32>
    %3 = vector.broadcast %1 : vector<1x256xf32> to vector<64x256xf32>
    %4 = arith.addf %2, %3 : vector<64x256xf32>
    %cst = arith.constant 2.000000e-01 : f32
    %5 = vector.broadcast %cst : f32 to vector<64x256xf32>
    %6 = arith.mulf %5, %4 : vector<64x256xf32>
    %7 = arith.maximumf %4, %6 : vector<64x256xf32>
    %c0_3 = arith.constant 0 : index
    %c0_4 = arith.constant 0 : index
    %8 = vector.load %arg1[%c0_3, %c0_4] : memref<64x256xi8, #tpu.memory_space<vmem>>, vector<64x256xi8>
    %c0_i8 = arith.constant 0 : i8
    %9 = vector.broadcast %c0_i8 : i8 to vector<64x256xi8>
    %10 = arith.cmpi ne, %8, %9 : vector<64x256xi8>
    %cst_5 = arith.constant -1.000000e+30 : f32
    %11 = vector.broadcast %cst_5 : f32 to vector<64x256xf32>
    %12 = arith.select %10, %7, %11 : vector<64x256xi1>, vector<64x256xf32>
    %cst_6 = arith.constant dense<0xFF800000> : vector<64xf32>
    %13 = vector.multi_reduction <maximumf>, %12, %cst_6 [1] : vector<64x256xf32> to vector<64xf32>
    %14 = vector.shape_cast %13 : vector<64xf32> to vector<64x1xf32>
    %15 = vector.broadcast %14 : vector<64x1xf32> to vector<64x256xf32>
    %16 = arith.subf %12, %15 : vector<64x256xf32>
    %17 = math.exp %16 : vector<64x256xf32>
    %cst_7 = arith.constant dense<0.000000e+00> : vector<64xf32>
    %18 = vector.multi_reduction <add>, %17, %cst_7 [1] : vector<64x256xf32> to vector<64xf32>
    %19 = vector.shape_cast %18 : vector<64xf32> to vector<64x1xf32>
    %20 = tpu.reciprocal %19 {approx = true} : vector<64x1xf32> -> vector<64x1xf32>
    %21 = vector.broadcast %20 : vector<64x1xf32> to vector<64x256xf32>
    %22 = arith.mulf %17, %21 : vector<64x256xf32>
    %23 = arith.truncf %22 : vector<64x256xf32> to vector<64x256xbf16>
    %c0_8 = arith.constant 0 : index
    %c0_9 = arith.constant 0 : index
    %24 = vector.load %arg4[%c0_8, %c0_9] : memref<256x128xbf16, #tpu.memory_space<vmem>>, vector<256x128xbf16>
    %cst_10 = arith.constant dense<0.000000e+00> : vector<64x128xf32>
    %25 = tpu.matmul %23, %24, %cst_10 {dimension_numbers = #tpu.dot_dimension_numbers<[1], [0], [0], [1], [0, 0, 1, 1], [], []>} : vector<64x256xbf16>, vector<256x128xbf16>, vector<64x128xf32> -> vector<64x128xf32>
    %c0_11 = arith.constant 0 : index
    %c0_12 = arith.constant 0 : index
    %26 = vector.load %arg5[%c0_11, %c0_12] : memref<1x128xf32, #tpu.memory_space<vmem>>, vector<1x128xf32>
    %27 = vector.broadcast %26 : vector<1x128xf32> to vector<64x128xf32>
    %28 = arith.addf %25, %27 : vector<64x128xf32>
    %c0_13 = arith.constant 0 : index
    %c0_14 = arith.constant 0 : index
    %29 = vector.load %arg6[%c0_13, %c0_14] : memref<64x128xf32, #tpu.memory_space<vmem>>, vector<64x128xf32>
    tpu.vector_store %arg6[%c0_13, %c0_14], %28 {strides = array<i32>} : memref<64x128xf32, #tpu.memory_space<vmem>>, vector<64x128xf32>,
    return
  }
  func.func @transform_0(%arg0: i32) -> (i32, i32) {
    %c0_i32 = arith.constant 0 : i32
    %c0_i32_0 = arith.constant 0 : i32
    return %arg0, %c0_i32 : i32, i32
  }
  func.func @transform_1(%arg0: i32) -> (i32, i32) {
    %c0_i32 = arith.constant 0 : i32
    %c0_i32_0 = arith.constant 0 : i32
    return %arg0, %c0_i32 : i32, i32
  }
  func.func @transform_2(%arg0: i32) -> (i32, i32) {
    %c0_i32 = arith.constant 0 : i32
    %c0_i32_0 = arith.constant 0 : i32
    %c0_i32_1 = arith.constant 0 : i32
    return %c0_i32, %c0_i32_0 : i32, i32
  }
  func.func @transform_3(%arg0: i32) -> (i32, i32) {
    %c0_i32 = arith.constant 0 : i32
    %c0_i32_0 = arith.constant 0 : i32
    %c0_i32_1 = arith.constant 0 : i32
    return %c0_i32, %c0_i32_0 : i32, i32
  }
  func.func @transform_4(%arg0: i32) -> (i32, i32) {
    %c0_i32 = arith.constant 0 : i32
    %c0_i32_0 = arith.constant 0 : i32
    %c0_i32_1 = arith.constant 0 : i32
    return %c0_i32, %c0_i32_0 : i32, i32
  }
  func.func @transform_5(%arg0: i32) -> (i32, i32) {
    %c0_i32 = arith.constant 0 : i32
    %c0_i32_0 = arith.constant 0 : i32
    return %arg0, %c0_i32 : i32, i32
  }
}

module attributes {stable_mosaic.version = 11 : i64} {
  func.func @_gat_proj_kernel(%arg0: i32, %arg1: memref<64x32xbf16, #tpu.memory_space<vmem>>, %arg2: memref<32x128xbf16, #tpu.memory_space<vmem>>, %arg3: memref<1x128xf32, #tpu.memory_space<vmem>>, %arg4: memref<1x128xf32, #tpu.memory_space<vmem>>, %arg5: memref<64x128xbf16, #tpu.memory_space<vmem>>, %arg6: memref<64x1xf32, #tpu.memory_space<vmem>>, %arg7: memref<64x1xf32, #tpu.memory_space<vmem>>) attributes {dimension_semantics = [#tpu.dimension_semantics<parallel>], iteration_bounds = array<i64: 4>, scalar_prefetch = 0 : i64, scratch_operands = 0 : i64, tpu.core_type = #tpu.core_type<tc>, window_params = [{transform_indices = @transform_0, window_bounds = array<i64: 64, 32>}, {pipeline_mode = #tpu.pipeline_mode<synchronous>, transform_indices = @transform_1, window_bounds = array<i64: 32, 128>}, {pipeline_mode = #tpu.pipeline_mode<synchronous>, transform_indices = @transform_2, window_bounds = array<i64: 1, 128>}, {pipeline_mode = #tpu.pipeline_mode<synchronous>, transform_indices = @transform_3, window_bounds = array<i64: 1, 128>}, {transform_indices = @transform_4, window_bounds = array<i64: 64, 128>}, {transform_indices = @transform_5, window_bounds = array<i64: 64, 1>}, {transform_indices = @transform_6, window_bounds = array<i64: 64, 1>}]} {
    %c0 = arith.constant 0 : index
    %c0_0 = arith.constant 0 : index
    %0 = vector.load %arg1[%c0, %c0_0] : memref<64x32xbf16, #tpu.memory_space<vmem>>, vector<64x32xbf16>
    %c0_1 = arith.constant 0 : index
    %c0_2 = arith.constant 0 : index
    %1 = vector.load %arg2[%c0_1, %c0_2] : memref<32x128xbf16, #tpu.memory_space<vmem>>, vector<32x128xbf16>
    %cst = arith.constant dense<0.000000e+00> : vector<64x128xf32>
    %2 = tpu.matmul %0, %1, %cst {dimension_numbers = #tpu.dot_dimension_numbers<[1], [0], [0], [1], [0, 0, 1, 1], [], []>} : vector<64x32xbf16>, vector<32x128xbf16>, vector<64x128xf32> -> vector<64x128xf32>
    %3 = arith.truncf %2 : vector<64x128xf32> to vector<64x128xbf16>
    %c0_3 = arith.constant 0 : index
    %c0_4 = arith.constant 0 : index
    %4 = vector.load %arg5[%c0_3, %c0_4] : memref<64x128xbf16, #tpu.memory_space<vmem>>, vector<64x128xbf16>
    tpu.vector_store %arg5[%c0_3, %c0_4], %3 {strides = array<i32>} : memref<64x128xbf16, #tpu.memory_space<vmem>>, vector<64x128xbf16>,
    %c0_5 = arith.constant 0 : index
    %c0_6 = arith.constant 0 : index
    %5 = vector.load %arg3[%c0_5, %c0_6] : memref<1x128xf32, #tpu.memory_space<vmem>>, vector<1x128xf32>
    %6 = vector.broadcast %5 : vector<1x128xf32> to vector<64x128xf32>
    %7 = arith.mulf %2, %6 : vector<64x128xf32>
    %cst_7 = arith.constant dense<0.000000e+00> : vector<64xf32>
    %8 = vector.multi_reduction <add>, %7, %cst_7 [1] : vector<64x128xf32> to vector<64xf32>
    %9 = vector.shape_cast %8 : vector<64xf32> to vector<64x1xf32>
    %c0_8 = arith.constant 0 : index
    %c0_9 = arith.constant 0 : index
    %10 = vector.load %arg6[%c0_8, %c0_9] : memref<64x1xf32, #tpu.memory_space<vmem>>, vector<64x1xf32>
    tpu.vector_store %arg6[%c0_8, %c0_9], %9 {strides = array<i32>} : memref<64x1xf32, #tpu.memory_space<vmem>>, vector<64x1xf32>,
    %c0_10 = arith.constant 0 : index
    %c0_11 = arith.constant 0 : index
    %11 = vector.load %arg4[%c0_10, %c0_11] : memref<1x128xf32, #tpu.memory_space<vmem>>, vector<1x128xf32>
    %12 = vector.broadcast %11 : vector<1x128xf32> to vector<64x128xf32>
    %13 = arith.mulf %2, %12 : vector<64x128xf32>
    %cst_12 = arith.constant dense<0.000000e+00> : vector<64xf32>
    %14 = vector.multi_reduction <add>, %13, %cst_12 [1] : vector<64x128xf32> to vector<64xf32>
    %15 = vector.shape_cast %14 : vector<64xf32> to vector<64x1xf32>
    %c0_13 = arith.constant 0 : index
    %c0_14 = arith.constant 0 : index
    %16 = vector.load %arg7[%c0_13, %c0_14] : memref<64x1xf32, #tpu.memory_space<vmem>>, vector<64x1xf32>
    tpu.vector_store %arg7[%c0_13, %c0_14], %15 {strides = array<i32>} : memref<64x1xf32, #tpu.memory_space<vmem>>, vector<64x1xf32>,
    return
  }
  func.func @transform_0(%arg0: i32) -> (i32, i32) {
    %c0_i32 = arith.constant 0 : i32
    %c0_i32_0 = arith.constant 0 : i32
    return %arg0, %c0_i32 : i32, i32
  }
  func.func @transform_1(%arg0: i32) -> (i32, i32) {
    %c0_i32 = arith.constant 0 : i32
    %c0_i32_0 = arith.constant 0 : i32
    %c0_i32_1 = arith.constant 0 : i32
    return %c0_i32, %c0_i32_0 : i32, i32
  }
  func.func @transform_2(%arg0: i32) -> (i32, i32) {
    %c0_i32 = arith.constant 0 : i32
    %c0_i32_0 = arith.constant 0 : i32
    %c0_i32_1 = arith.constant 0 : i32
    return %c0_i32, %c0_i32_0 : i32, i32
  }
  func.func @transform_3(%arg0: i32) -> (i32, i32) {
    %c0_i32 = arith.constant 0 : i32
    %c0_i32_0 = arith.constant 0 : i32
    %c0_i32_1 = arith.constant 0 : i32
    return %c0_i32, %c0_i32_0 : i32, i32
  }
  func.func @transform_4(%arg0: i32) -> (i32, i32) {
    %c0_i32 = arith.constant 0 : i32
    %c0_i32_0 = arith.constant 0 : i32
    return %arg0, %c0_i32 : i32, i32
  }
  func.func @transform_5(%arg0: i32) -> (i32, i32) {
    %c0_i32 = arith.constant 0 : i32
    %c0_i32_0 = arith.constant 0 : i32
    return %arg0, %c0_i32 : i32, i32
  }
  func.func @transform_6(%arg0: i32) -> (i32, i32) {
    %c0_i32 = arith.constant 0 : i32
    %c0_i32_0 = arith.constant 0 : i32
    return %arg0, %c0_i32 : i32, i32
  }
}

module attributes {stable_mosaic.version = 11 : i64} {
  func.func @_gat_attn_kernel(%arg0: i32, %arg1: memref<64x256xi8, #tpu.memory_space<vmem>>, %arg2: memref<64x1xf32, #tpu.memory_space<vmem>>, %arg3: memref<1x256xf32, #tpu.memory_space<vmem>>, %arg4: memref<256x128xbf16, #tpu.memory_space<vmem>>, %arg5: memref<1x128xf32, #tpu.memory_space<vmem>>, %arg6: memref<64x128xbf16, #tpu.memory_space<vmem>>) attributes {dimension_semantics = [#tpu.dimension_semantics<parallel>], iteration_bounds = array<i64: 4>, scalar_prefetch = 0 : i64, scratch_operands = 0 : i64, tpu.core_type = #tpu.core_type<tc>, window_params = [{transform_indices = @transform_0, window_bounds = array<i64: 64, 256>}, {transform_indices = @transform_1, window_bounds = array<i64: 64, 1>}, {pipeline_mode = #tpu.pipeline_mode<synchronous>, transform_indices = @transform_2, window_bounds = array<i64: 1, 256>}, {pipeline_mode = #tpu.pipeline_mode<synchronous>, transform_indices = @transform_3, window_bounds = array<i64: 256, 128>}, {pipeline_mode = #tpu.pipeline_mode<synchronous>, transform_indices = @transform_4, window_bounds = array<i64: 1, 128>}, {transform_indices = @transform_5, window_bounds = array<i64: 64, 128>}]} {
    %c0 = arith.constant 0 : index
    %c0_0 = arith.constant 0 : index
    %0 = vector.load %arg2[%c0, %c0_0] : memref<64x1xf32, #tpu.memory_space<vmem>>, vector<64x1xf32>
    %c0_1 = arith.constant 0 : index
    %c0_2 = arith.constant 0 : index
    %1 = vector.load %arg3[%c0_1, %c0_2] : memref<1x256xf32, #tpu.memory_space<vmem>>, vector<1x256xf32>
    %2 = vector.broadcast %0 : vector<64x1xf32> to vector<64x256xf32>
    %3 = vector.broadcast %1 : vector<1x256xf32> to vector<64x256xf32>
    %4 = arith.addf %2, %3 : vector<64x256xf32>
    %cst = arith.constant 2.000000e-01 : f32
    %5 = vector.broadcast %cst : f32 to vector<64x256xf32>
    %6 = arith.mulf %5, %4 : vector<64x256xf32>
    %7 = arith.maximumf %4, %6 : vector<64x256xf32>
    %c0_3 = arith.constant 0 : index
    %c0_4 = arith.constant 0 : index
    %8 = vector.load %arg1[%c0_3, %c0_4] : memref<64x256xi8, #tpu.memory_space<vmem>>, vector<64x256xi8>
    %c0_i8 = arith.constant 0 : i8
    %9 = vector.broadcast %c0_i8 : i8 to vector<64x256xi8>
    %10 = arith.cmpi ne, %8, %9 : vector<64x256xi8>
    %cst_5 = arith.constant -1.000000e+30 : f32
    %11 = vector.broadcast %cst_5 : f32 to vector<64x256xf32>
    %12 = arith.select %10, %7, %11 : vector<64x256xi1>, vector<64x256xf32>
    %cst_6 = arith.constant dense<0xFF800000> : vector<64xf32>
    %13 = vector.multi_reduction <maximumf>, %12, %cst_6 [1] : vector<64x256xf32> to vector<64xf32>
    %14 = vector.shape_cast %13 : vector<64xf32> to vector<64x1xf32>
    %15 = vector.broadcast %14 : vector<64x1xf32> to vector<64x256xf32>
    %16 = arith.subf %12, %15 : vector<64x256xf32>
    %17 = math.exp %16 : vector<64x256xf32>
    %cst_7 = arith.constant dense<0.000000e+00> : vector<64xf32>
    %18 = vector.multi_reduction <add>, %17, %cst_7 [1] : vector<64x256xf32> to vector<64xf32>
    %19 = vector.shape_cast %18 : vector<64xf32> to vector<64x1xf32>
    %20 = tpu.reciprocal %19 {approx = true} : vector<64x1xf32> -> vector<64x1xf32>
    %21 = vector.broadcast %20 : vector<64x1xf32> to vector<64x256xf32>
    %22 = arith.mulf %17, %21 : vector<64x256xf32>
    %23 = arith.truncf %22 : vector<64x256xf32> to vector<64x256xbf16>
    %c0_8 = arith.constant 0 : index
    %c0_9 = arith.constant 0 : index
    %24 = vector.load %arg4[%c0_8, %c0_9] : memref<256x128xbf16, #tpu.memory_space<vmem>>, vector<256x128xbf16>
    %cst_10 = arith.constant dense<0.000000e+00> : vector<64x128xf32>
    %25 = tpu.matmul %23, %24, %cst_10 {dimension_numbers = #tpu.dot_dimension_numbers<[1], [0], [0], [1], [0, 0, 1, 1], [], []>} : vector<64x256xbf16>, vector<256x128xbf16>, vector<64x128xf32> -> vector<64x128xf32>
    %c0_11 = arith.constant 0 : index
    %c0_12 = arith.constant 0 : index
    %26 = vector.load %arg5[%c0_11, %c0_12] : memref<1x128xf32, #tpu.memory_space<vmem>>, vector<1x128xf32>
    %27 = vector.broadcast %26 : vector<1x128xf32> to vector<64x128xf32>
    %28 = arith.addf %25, %27 : vector<64x128xf32>
    %cst_13 = arith.constant 0.000000e+00 : f32
    %29 = vector.broadcast %cst_13 : f32 to vector<64x128xf32>
    %30 = arith.maximumf %28, %29 : vector<64x128xf32>
    %31 = arith.truncf %30 : vector<64x128xf32> to vector<64x128xbf16>
    %c0_14 = arith.constant 0 : index
    %c0_15 = arith.constant 0 : index
    %32 = vector.load %arg6[%c0_14, %c0_15] : memref<64x128xbf16, #tpu.memory_space<vmem>>, vector<64x128xbf16>
    tpu.vector_store %arg6[%c0_14, %c0_15], %31 {strides = array<i32>} : memref<64x128xbf16, #tpu.memory_space<vmem>>, vector<64x128xbf16>,
    return
  }
  func.func @transform_0(%arg0: i32) -> (i32, i32) {
    %c0_i32 = arith.constant 0 : i32
    %c0_i32_0 = arith.constant 0 : i32
    return %arg0, %c0_i32 : i32, i32
  }
  func.func @transform_1(%arg0: i32) -> (i32, i32) {
    %c0_i32 = arith.constant 0 : i32
    %c0_i32_0 = arith.constant 0 : i32
    return %arg0, %c0_i32 : i32, i32
  }
  func.func @transform_2(%arg0: i32) -> (i32, i32) {
    %c0_i32 = arith.constant 0 : i32
    %c0_i32_0 = arith.constant 0 : i32
    %c0_i32_1 = arith.constant 0 : i32
    return %c0_i32, %c0_i32_0 : i32, i32
  }
  func.func @transform_3(%arg0: i32) -> (i32, i32) {
    %c0_i32 = arith.constant 0 : i32
    %c0_i32_0 = arith.constant 0 : i32
    %c0_i32_1 = arith.constant 0 : i32
    return %c0_i32, %c0_i32_0 : i32, i32
  }
  func.func @transform_4(%arg0: i32) -> (i32, i32) {
    %c0_i32 = arith.constant 0 : i32
    %c0_i32_0 = arith.constant 0 : i32
    %c0_i32_1 = arith.constant 0 : i32
    return %c0_i32, %c0_i32_0 : i32, i32
  }
  func.func @transform_5(%arg0: i32) -> (i32, i32) {
    %c0_i32 = arith.constant 0 : i32
    %c0_i32_0 = arith.constant 0 : i32
    return %arg0, %c0_i32 : i32, i32
  }
}

module attributes {stable_mosaic.version = 11 : i64} {
  func.func @_gat_proj_kernel(%arg0: i32, %arg1: memref<64x128xbf16, #tpu.memory_space<vmem>>, %arg2: memref<128x128xbf16, #tpu.memory_space<vmem>>, %arg3: memref<1x128xf32, #tpu.memory_space<vmem>>, %arg4: memref<1x128xf32, #tpu.memory_space<vmem>>, %arg5: memref<64x128xbf16, #tpu.memory_space<vmem>>, %arg6: memref<64x1xf32, #tpu.memory_space<vmem>>, %arg7: memref<64x1xf32, #tpu.memory_space<vmem>>) attributes {dimension_semantics = [#tpu.dimension_semantics<parallel>], iteration_bounds = array<i64: 4>, scalar_prefetch = 0 : i64, scratch_operands = 0 : i64, tpu.core_type = #tpu.core_type<tc>, window_params = [{transform_indices = @transform_0, window_bounds = array<i64: 64, 128>}, {pipeline_mode = #tpu.pipeline_mode<synchronous>, transform_indices = @transform_1, window_bounds = array<i64: 128, 128>}, {pipeline_mode = #tpu.pipeline_mode<synchronous>, transform_indices = @transform_2, window_bounds = array<i64: 1, 128>}, {pipeline_mode = #tpu.pipeline_mode<synchronous>, transform_indices = @transform_3, window_bounds = array<i64: 1, 128>}, {transform_indices = @transform_4, window_bounds = array<i64: 64, 128>}, {transform_indices = @transform_5, window_bounds = array<i64: 64, 1>}, {transform_indices = @transform_6, window_bounds = array<i64: 64, 1>}]} {
    %c0 = arith.constant 0 : index
    %c0_0 = arith.constant 0 : index
    %0 = vector.load %arg1[%c0, %c0_0] : memref<64x128xbf16, #tpu.memory_space<vmem>>, vector<64x128xbf16>
    %c0_1 = arith.constant 0 : index
    %c0_2 = arith.constant 0 : index
    %1 = vector.load %arg2[%c0_1, %c0_2] : memref<128x128xbf16, #tpu.memory_space<vmem>>, vector<128x128xbf16>
    %cst = arith.constant dense<0.000000e+00> : vector<64x128xf32>
    %2 = tpu.matmul %0, %1, %cst {dimension_numbers = #tpu.dot_dimension_numbers<[1], [0], [0], [1], [0, 0, 1, 1], [], []>} : vector<64x128xbf16>, vector<128x128xbf16>, vector<64x128xf32> -> vector<64x128xf32>
    %3 = arith.truncf %2 : vector<64x128xf32> to vector<64x128xbf16>
    %c0_3 = arith.constant 0 : index
    %c0_4 = arith.constant 0 : index
    %4 = vector.load %arg5[%c0_3, %c0_4] : memref<64x128xbf16, #tpu.memory_space<vmem>>, vector<64x128xbf16>
    tpu.vector_store %arg5[%c0_3, %c0_4], %3 {strides = array<i32>} : memref<64x128xbf16, #tpu.memory_space<vmem>>, vector<64x128xbf16>,
    %c0_5 = arith.constant 0 : index
    %c0_6 = arith.constant 0 : index
    %5 = vector.load %arg3[%c0_5, %c0_6] : memref<1x128xf32, #tpu.memory_space<vmem>>, vector<1x128xf32>
    %6 = vector.broadcast %5 : vector<1x128xf32> to vector<64x128xf32>
    %7 = arith.mulf %2, %6 : vector<64x128xf32>
    %cst_7 = arith.constant dense<0.000000e+00> : vector<64xf32>
    %8 = vector.multi_reduction <add>, %7, %cst_7 [1] : vector<64x128xf32> to vector<64xf32>
    %9 = vector.shape_cast %8 : vector<64xf32> to vector<64x1xf32>
    %c0_8 = arith.constant 0 : index
    %c0_9 = arith.constant 0 : index
    %10 = vector.load %arg6[%c0_8, %c0_9] : memref<64x1xf32, #tpu.memory_space<vmem>>, vector<64x1xf32>
    tpu.vector_store %arg6[%c0_8, %c0_9], %9 {strides = array<i32>} : memref<64x1xf32, #tpu.memory_space<vmem>>, vector<64x1xf32>,
    %c0_10 = arith.constant 0 : index
    %c0_11 = arith.constant 0 : index
    %11 = vector.load %arg4[%c0_10, %c0_11] : memref<1x128xf32, #tpu.memory_space<vmem>>, vector<1x128xf32>
    %12 = vector.broadcast %11 : vector<1x128xf32> to vector<64x128xf32>
    %13 = arith.mulf %2, %12 : vector<64x128xf32>
    %cst_12 = arith.constant dense<0.000000e+00> : vector<64xf32>
    %14 = vector.multi_reduction <add>, %13, %cst_12 [1] : vector<64x128xf32> to vector<64xf32>
    %15 = vector.shape_cast %14 : vector<64xf32> to vector<64x1xf32>
    %c0_13 = arith.constant 0 : index
    %c0_14 = arith.constant 0 : index
    %16 = vector.load %arg7[%c0_13, %c0_14] : memref<64x1xf32, #tpu.memory_space<vmem>>, vector<64x1xf32>
    tpu.vector_store %arg7[%c0_13, %c0_14], %15 {strides = array<i32>} : memref<64x1xf32, #tpu.memory_space<vmem>>, vector<64x1xf32>,
    return
  }
  func.func @transform_0(%arg0: i32) -> (i32, i32) {
    %c0_i32 = arith.constant 0 : i32
    %c0_i32_0 = arith.constant 0 : i32
    return %arg0, %c0_i32 : i32, i32
  }
  func.func @transform_1(%arg0: i32) -> (i32, i32) {
    %c0_i32 = arith.constant 0 : i32
    %c0_i32_0 = arith.constant 0 : i32
    %c0_i32_1 = arith.constant 0 : i32
    return %c0_i32, %c0_i32_0 : i32, i32
  }
  func.func @transform_2(%arg0: i32) -> (i32, i32) {
    %c0_i32 = arith.constant 0 : i32
    %c0_i32_0 = arith.constant 0 : i32
    %c0_i32_1 = arith.constant 0 : i32
    return %c0_i32, %c0_i32_0 : i32, i32
  }
  func.func @transform_3(%arg0: i32) -> (i32, i32) {
    %c0_i32 = arith.constant 0 : i32
    %c0_i32_0 = arith.constant 0 : i32
    %c0_i32_1 = arith.constant 0 : i32
    return %c0_i32, %c0_i32_0 : i32, i32
  }
  func.func @transform_4(%arg0: i32) -> (i32, i32) {
    %c0_i32 = arith.constant 0 : i32
    %c0_i32_0 = arith.constant 0 : i32
    return %arg0, %c0_i32 : i32, i32
  }
  func.func @transform_5(%arg0: i32) -> (i32, i32) {
    %c0_i32 = arith.constant 0 : i32
    %c0_i32_0 = arith.constant 0 : i32
    return %arg0, %c0_i32 : i32, i32
  }
  func.func @transform_6(%arg0: i32) -> (i32, i32) {
    %c0_i32 = arith.constant 0 : i32
    %c0_i32_0 = arith.constant 0 : i32
    return %arg0, %c0_i32 : i32, i32
  }
}

</mosaic_0001>

<bundles_post_ra>
// kernel: tpu_custom_call.1
= control target key start
LH: loop header
LB: loop body
LE: loop exit
PB: predicated region body
PF: predicated region fallthrough
CT: control target
= control target key end

     0   :  { %6 = vsyncpa [#allocation3], 0  ;;  %s448_s0 = inlined_call_operand.hbm [shape: f32[8,128], index: 0, kind: input, shape index: {}]   ;;  %s449_s1 = inlined_call_operand.hbm [shape: f32[16,128], index: 1, kind: output, shape index: {}]  }
   0x1   :  { %7 = vsyncpa [#allocation4], 0 }
   0x2   :  { %9 = vsyncpa [#allocation4 + $0x1], 0  ;;  %s348_s6 = smov 0   ;;  %s350_s7 = smov 0  }
   0x3   :  { %s352_s8 = smov 0   ;;  %s354_s9 = smov 0  }
   0x4 LB: > { %s369_s10 = sadd.s32 4294967295, %s334_s9   ;;  %s184_s11 = sadd.s32 4294967294, %s334_s9   ;;  %s334_s9 = sphi %s354_s9, %s457_s9   ;;  %s330_s8 = sphi %s352_s8, %s456_s8   ;;  %s326_s7 = sphi %s350_s7, %s455_s7   ;;  %s322_s6 = sphi %s348_s6, %s454_s6  }
   0x5   : > { %s373_s12 = sadd.s32 1, %s334_s9   ;;  %s43_s13 = sadd.s32 1, %s330_s8 }
   0x6   : > { %s40_s14 = ssub.s32 %s334_s9, %s373_s12  ;;  %p53_p0 = scmp.ne.s32.totalorder %s330_s8, %s326_s7 }
   0x7   : > { %p41_p1 = scmp.eq.s32.totalorder %s40_s14, 0  ;;  %p54_p2 = scmp.eq.s32.totalorder %s369_s10, 1 }
   0x8   : > { %p59_p3 = scmp.ne.s32.totalorder %s326_s7, %s322_s6  ;;  %p60_p4 = scmp.eq.s32.totalorder %s184_s11, 1 }
   0x9   : > { %s384_s15 = scalar_select %p41_p1, %s330_s8, %s43_s13  }
   0xa   : > { %p386_p5 = por %p54_p2, %p53_p0  ;;  %p390_p6 = por %p60_p4, %p59_p3 }
   0xb   : > { %p185_p7 = scmp.ge.s32.totalorder %s334_s9, 1  ;;  %p67_p8 = scmp.lt.s32.totalorder %s334_s9, 3 }
   0xc   : > { %s451_s17 = scalar_select %p390_p6, 1, 0 }
   0xd   : > { %p208_p9 = scmp.eq.s32.totalorder %s369_s10, 0  ;;  %p397_p10 = pnand %p185_p7, %p67_p8 }
   0xe   : > { %s336_s19 = smov [#allocation2]  }
   0xf   : > { %s80_s20 = sshll.u32 %s336_s19, 4  ;;  %p200_p11 = pneg %p397_p10  ;;  %s81_s20 = int_to_ptr.vmem [resolvable:$true] %s80_s20 }
  0x10   : > { %s255_s21 = scalar_lea.vmem %s81_s20, 128  ;;  %p263_p3 = scmp.lt.s32.totalorder %s81_s20, %s81_s20 }
  0x11   : > { %p201_p12 = pnand %p208_p9, %p200_p11  ;;  %p256_p0 = scmp.ne.s32.totalorder %s81_s20, %s255_s21 }
  0x12   : > { %p264_p4 = scmp.lt.s32.totalorder %s255_s21, %s255_s21 }
  0x13   : > { %p246_p13 = pneg %p201_p12 }
  0x14   : > { %p265_p6 = por %p264_p4, %p263_p3 }
  0x15   : > { %p258_p1 = pnand %p256_p0, %p246_p13 }
  0x17   : > { %p259_p2 = pneg %p258_p1 }
  0x19   : > { %p266_p7 = pnand %p265_p6, %p259_p2 }
  0x1b   : > { %269 = shalt.err (!%p266_p7)
}
  0x1c   : > { %203 = dma.hbm_to_vmem [thread:$0]  (!%p201_p12), %s448_s0, 128, %s81_s20, [#allocation3]  }
  0x1d   : > { %93 = sbr.rel (%p397_p10) target bundleno = 60 (0x3c), region = 24 }
  0x22   : > { %313 = dma.done.wait (%p208_p9), [#allocation3], 128  }
  0x23   : > { %315 = vsyncadd (%p208_p9), [#allocation3], 4294967168  ;;  %s105_s24 = sand.u32 1, %s326_s7   ;;  %s191_s28 = sshll.u32 %s369_s10, 7  ;;  %v108_v0 = vld [vmem:[#allocation2] sm:$0xff] }
  0x24   : > { %s189_s25 = sshll.u32 %s105_s24, 3  ;;  %v109_v1 = vmul.f32 2.0, %v108_v0  ;;  %s123_s2 = scalar_lea.hbm %s449_s1, %s191_s28 }
  0x25   : > { %s107_s26 = scalar_lea.vmem [#allocation5], %s189_s25  ;;  %s112_s3 = scalar_lea.sflag [#allocation4], %s105_s24 }
  0x26   : > { %s125_s27 = sshll.u32 %s107_s26, 4  ;;  %110 = vst [vmem:[%s107_s26] sm:$0xff] %v109_v1  ;;  %s337_s5 = smov [#allocation5]   ;;  %s126_s27 = int_to_ptr.vmem [resolvable:$true] %s125_s27 }
  0x27   : > { %s270_s4 = scalar_lea.vmem %s126_s27, 128  ;;  %s274_s11 = sshll.u32 %s337_s5, 4  ;;  %s275_s11 = int_to_ptr.vmem [resolvable:$false] %s274_s11 }
  0x28   : > { %p271_p6 = scmp.ne.s32.totalorder %s126_s27, %s270_s4  ;;  %s276_s13 = scalar_lea.vmem %s275_s11, 256 }
  0x29   : > { %p277_p10 = scmp.lt.s32.totalorder %s126_s27, %s275_s11  ;;  %p278_p11 = scmp.lt.s32.totalorder %s276_s13, %s270_s4 }
  0x2a   : > { %p272_p8 = pnand %p271_p6, %p386_p5 }
  0x2b   : > { %p279_p12 = por %p278_p11, %p277_p10 }
  0x2c   : > { %p273_p9 = pneg %p272_p8 }
  0x2e   : > { %p280_p13 = pnand %p279_p12, %p273_p9 }
  0x30   : > { %283 = shalt.err (!%p280_p13)
}
  0x31   : > { %s284_s10 = scalar_lea.hbm %s123_s2, 128  ;;  %s288_s19 = scalar_lea.hbm %s449_s1, 256 }
  0x32   : > { %p285_p0 = scmp.ne.s32.totalorder %s123_s2, %s284_s10  ;;  %p289_p3 = scmp.lt.s32.totalorder %s123_s2, %s449_s1 }
  0x33   : > { %p290_p4 = scmp.lt.s32.totalorder %s288_s19, %s284_s10 }
  0x34   : > { %p286_p1 = pnand %p285_p0, %p386_p5 }
  0x35   : > { %p291_p7 = por %p290_p4, %p289_p3 }
  0x36   : > { %p287_p2 = pneg %p286_p1 }
  0x38   : > { %p292_p6 = pnand %p291_p7, %p287_p2 }
  0x3a   : > { %295 = shalt.err (!%p292_p6)
}
  0x3b   : > { %198 = dma.vmem_to_hbm [thread:$0]  (%p386_p5), %s126_s27, 128, %s123_s2, %s112_s3  }
  0x3c PF: > { %p210_p8 = scmp.ge.s32.totalorder %s334_s9, 2  ;;  %s137_s22 = sand.u32 1, %s322_s6  }
  0x3d   : > { %p453_p9 = scmp.ne.s32.totalorder %s451_s17, 0  ;;  %s138_s23 = scalar_lea.sflag [#allocation4], %s137_s22 }
  0x3f   : > { %p205_p10 = pnand %p210_p8, %p453_p9 }
  0x41   : > { %p206_p11 = pneg %p205_p10 }
  0x43   : > { %317 = dma.done.wait (%p206_p11), %s138_s23, 128  }
  0x44   : > { %319 = vsyncadd (%p206_p11), %s138_s23, 4294967168  ;;  %p12_p12 = scmp.ge.s32.totalorder %s373_s12, 4   ;;  %s454_s6 = smov %s326_s7 }
  0x45   : > { %s455_s7 = smov %s330_s8  ;;  %s456_s8 = smov %s384_s15 }
  0x46   : > { %s457_s9 = smov %s373_s12  ;;  %14 = sbr.rel (!%p12_p12) target bundleno = 4 (0x4), region = 61 }
  0x4b   :  { %143 = vsyncpa [#allocation3], 1 }
  0x4c   :  { %145 = vsyncpa [#allocation3 + $0x1], 1 }
  0x4d   :  { %146 = vsyncpa [#allocation4], 1 }
  0x4e   :  { %148 = vsyncpa [#allocation4 + $0x1], 1 }

// kernel: gat_forward.11
= control target key start
LH: loop header
LB: loop body
LE: loop exit
PB: predicated region body
PF: predicated region fallthrough
CT: control target
= control target key end

     0   :  { %10 = vsyncpa [#allocation3], 0  ;;  %s1630_s0 = inlined_call_operand.vmem [shape: s8[256,256], index: 0, kind: input, shape index: {}]   ;;  %s1631_s1 = inlined_call_operand.vmem [shape: f32[256,1], index: 1, kind: input, shape index: {}]   ;;  %s1632_s2 = inlined_call_operand.vmem [shape: f32[1,256], index: 2, kind: input, shape index: {}]   ;;  %s1633_s3 = inlined_call_operand.vmem [shape: bf16[256,128], index: 3, kind: input, shape index: {}]   ;;  %s1634_s4 = inlined_call_operand.vmem [shape: f32[1,128], index: 4, kind: input, shape index: {}]   ;;  %s1635_s5 = inlined_call_operand.hbm [shape: f32[256,128], index: 5, kind: output, shape index: {}]  }
   0x1   :  { %12 = vsyncpa [#allocation3 + $0x1], 0  ;;  %s1188_s18 = smov 0   ;;  %s1190_s19 = smov 0  }
   0x2   :  { %s1192_s20 = smov 0   ;;  %s1194_s21 = smov 0  }
   0x3 LB: > { %s1209_s22 = sadd.s32 4294967295, %s1152_s21   ;;  %s894_s23 = sadd.s32 4294967294, %s1152_s21   ;;  %s1152_s21 = sphi %s1194_s21, %s1671_s21   ;;  %s1148_s20 = sphi %s1192_s20, %s1670_s20   ;;  %s1144_s19 = sphi %s1190_s19, %s1669_s19   ;;  %s1140_s18 = sphi %s1188_s18, %s1668_s18  }
   0x4   : > { %s1213_s24 = sadd.s32 1, %s1152_s21   ;;  %s140_s25 = sadd.s32 1, %s1148_s20 }
   0x5   : > { %s137_s26 = ssub.s32 %s1152_s21, %s1213_s24  ;;  %p150_p0 = scmp.ne.s32.totalorder %s1148_s20, %s1144_s19 }
   0x6   : > { %p138_p1 = scmp.eq.s32.totalorder %s137_s26, 0  ;;  %p151_p2 = scmp.eq.s32.totalorder %s1209_s22, 3 }
   0x7   : > { %p156_p3 = scmp.ne.s32.totalorder %s1144_s19, %s1140_s18  ;;  %p157_p4 = scmp.eq.s32.totalorder %s894_s23, 3 }
   0x8   : > { %s1224_s27 = scalar_select %p138_p1, %s1148_s20, %s140_s25  }
   0x9   : > { %p1226_p5 = por %p151_p2, %p150_p0  ;;  %p1230_p6 = por %p157_p4, %p156_p3 }
   0xa   : > { %p897_p7 = scmp.ge.s32.totalorder %s1152_s21, 1  ;;  %p203_p8 = scmp.lt.s32.totalorder %s1152_s21, 5 }
   0xc   : > { %p204_p9 = pnand %p897_p7, %p203_p8 }
   0xd   : > { %s902_s30 = sshll.u32 (!%p204_p9), %s1209_s22, 3  ;;  %s899_s10 = sshll.u32 (!%p204_p9), %s1209_s22, 1 }
   0xe   : > { %207 = sbr.rel (%p204_p9) target bundleno = 710 (0x2c6), region = 40  ;;  %p245_p10 = scmp.lt.s32.totalorder (!%p204_p9), %s902_s30, 31 }
   0xf   : > { %p238_p11 = scmp.lt.s32.totalorder (!%p204_p9), %s899_s10, 7  ;;  %s234_s17 = sand.u32 (!%p204_p9), 1, %s1144_s19  }
  0x10   : > { %s898_s23 = sshll.u32 (!%p204_p9), %s234_s17, 6  ;;  %s1155_s12 = smov (!%p204_p9), [#allocation2]  }
  0x11   : > { %s1096_s13 = sshll.u32 (!%p204_p9), %s1155_s12, 4  ;;  %s1097_s13 = int_to_ptr.vmem [resolvable:$false] %s1096_s13 }
  0x13   : > { %v1154_v0 = vmov 0   ;;  %s1673_s30 = smov (!%p245_p10, %s902_s30), 31  ;;  %s1675_s10 = smov (!%p238_p11, %s899_s10), 7  ;;  %v304_v26 = vlaneseq  ;;  %v262_v50 = vld [vmem:[%s1632_s2] sm:$0x3] }
  0x14   : > { %1027 = vset.pattern.permute.xlu1 %v1154_v0  ;;  %1026 = vset.pattern.permute.xlu0 %v1154_v0  ;;  %s903_s6 = sshll.u32 %s1673_s30, 3  ;;  %s926_s11 = sshll.u32 %s1675_s10, 4 }
  0x15   : > { %s248_s9 = scalar_lea.vmem %s1631_s1, %s903_s6  ;;  %s242_s14 = scalar_lea.vmem %s1630_s0, %s926_s11  ;;  %v305_v38 = vshrl.u32 %v304_v26, 7 }
  0x16   : > { %v258_v1 = vld [vmem:[%s248_s9 + $0x20] sm:$0xff]  ;;  %v259_v3 = vld [vmem:[%s248_s9 + $0x28] sm:$0xff]  ;;  %v257_v5 = vld [vmem:[%s248_s9 + $0x18] sm:$0xff]  ;;  %s1569_s30 = scalar_lea.vmem [#allocation2], %s898_s23  ;;  %s927_s6 = sshll.u32 %s1209_s22, 10 }
  0x17   : > { %v254_v2 = vld [vmem:[%s248_s9] sm:$0xff]  ;;  %285 = vperm.xlu1 %1027, %v258_v1   ;;  %v255_v4 = vld [vmem:[%s248_s9 + $0x8] sm:$0xff]  ;;  %v256_v6 = vld [vmem:[%s248_s9 + $0x10] sm:$0xff]  ;;  %v306_v47 = vsub.s32 0, %v305_v38  ;;  %v310_v48 = vsub.s32 1, %v305_v38  ;;  %s820_s7 = sshll.u32 %s1569_s30, 4  ;;  %s1583_s10 = scalar_lea.hbm %s1635_s5, %s927_s6  ;;  %s1585_s7 = int_to_ptr.vmem [resolvable:$true] %s820_s7 }
  0x18   : > { %265 = vperm.xlu0 %1026, %v254_v2   ;;  %v261_v7 = vld [vmem:[%s248_s9 + $0x38] sm:$0xff]  ;;  %v260_v8 = vld [vmem:[%s248_s9 + $0x30] sm:$0xff]  ;;  %v362_v9 = vld [vmem:[%s242_s14] sm:$0xff]  ;;  %s1590_s11 = scalar_lea.sflag [#allocation3], %s234_s17  ;;  %s1092_s22 = scalar_lea.vmem %s1585_s7, 1024 }
  0x19   : > { %v363_v10 = vld [vmem:[%s242_s14 + $0x8] sm:$0xff]  ;;  %vm366_vm0 = vnez %v362_v9  ;;  %v364_v11 = vld [vmem:[%s242_s14 + $0x10] sm:$0xff]  ;;  %v365_v12 = vld [vmem:[%s242_s14 + $0x18] sm:$0xff]  ;;  %v1256_v57 = vrot.slane %v262_v50, %v306_v47  ;;  %v1258_v58 = vrot.slane %v262_v50, %v310_v48  ;;  %p1093_p12 = scmp.ne.s32.totalorder %s1585_s7, %s1092_s22  ;;  %s1098_s14 = scalar_lea.vmem %s1097_s13, 2048 }
  0x1a   : > { %vm367_vm1 = vnez %v363_v10  ;;  %v370_v13 = vsel %vm366_vm0, 16843009, %v1154_v0  ;;  %vm368_vm2 = vnez %v364_v11  ;;  %vm369_vm3 = vnez %v365_v12  ;;  %p1099_p1 = scmp.lt.s32.totalorder %s1585_s7, %s1097_s13  ;;  %p1100_p2 = scmp.lt.s32.totalorder %s1098_s14, %s1092_s22 }
  0x1b   : > { %290 = vperm.xlu1 %1027, %v259_v3   ;;  %v371_v14 = vsel %vm367_vm1, 16843009, %v1154_v0  ;;  %v374_v15 = vunpack.c.0.s8 %v370_v13  ;;  %v372_v17 = vsel %vm368_vm2, 16843009, %v1154_v0  ;;  %v373_v18 = vsel %vm369_vm3, 16843009, %v1154_v0  ;;  %p1094_p13 = pnand %p1093_p12, %p1226_p5 }
  0x1c   : > { %270 = vperm.xlu0 %1026, %v255_v4   ;;  %v375_v16 = vunpack.c.0.s8 %v371_v14  ;;  %v376_v19 = vunpack.c.1.s8 %v370_v13  ;;  %v377_v20 = vunpack.c.1.s8 %v371_v14  ;;  %v382_v22 = vunpack.c.0.s8 %v372_v17  ;;  %p1101_p3 = por %p1100_p2, %p1099_p1 }
  0x1d   : > { %v383_v23 = vunpack.c.0.s8 %v373_v18  ;;  %v378_v24 = vunpack.c.2.s8 %v370_v13  ;;  %v379_v25 = vunpack.c.2.s8 %v371_v14  ;;  %v384_v30 = vunpack.c.1.s8 %v372_v17  ;;  %p1095_p0 = pneg %p1094_p13 }
  0x1e   : > { %v390_v21 = vpack.c.b16 %v375_v16, %v374_v15  ;;  %v392_v27 = vpack.c.b16 %v377_v20, %v376_v19  ;;  %v385_v31 = vunpack.c.1.s8 %v373_v18  ;;  %v386_v33 = vunpack.c.2.s8 %v372_v17 }
  0x1f   : > { %280 = vperm.xlu1 %1027, %v257_v5   ;;  %v398_v29 = vpack.c.b16 %v383_v23, %v382_v22  ;;  %v394_v32 = vpack.c.b16 %v379_v25, %v378_v24  ;;  %v387_v34 = vunpack.c.2.s8 %v373_v18  ;;  %v380_v35 = vunpack.c.3.s8 %v370_v13  ;;  %p1102_p4 = pnand %p1101_p3, %p1095_p0 }
  0x20   : > { %275 = vperm.xlu0 %1026, %v256_v6   ;;  %v391_v28 = vpack.c.b8 %v390_v21, %v390_v21  ;;  %v381_v36 = vunpack.c.3.s8 %v371_v14  ;;  %v393_v37 = vpack.c.b8 %v392_v27, %v392_v27  ;;  %v400_v40 = vpack.c.b16 %v385_v31, %v384_v30 }
  0x21   : > { %v399_v39 = vpack.c.b8 %v398_v29, %v398_v29  ;;  %v395_v41 = vpack.c.b8 %v394_v32, %v394_v32  ;;  %v402_v42 = vpack.c.b16 %v387_v34, %v386_v33  ;;  %v388_v45 = vunpack.c.3.s8 %v372_v17 }
  0x22   : > { %vm406_vm4 = vnez %v391_v28  ;;  %v396_v43 = vpack.c.b16 %v381_v36, %v380_v35  ;;  %vm407_vm5 = vnez %v393_v37  ;;  %v389_v46 = vunpack.c.3.s8 %v373_v18 }
  0x23   : > { %300 = vperm.xlu1 %1027, %v261_v7   ;;  %v414_v44 = vsel %vm406_vm4, 16843009, %v1154_v0  ;;  %vm410_vm6 = vnez %v399_v39  ;;  %v401_v49 = vpack.c.b8 %v400_v40, %v400_v40  ;;  %vm408_vm7 = vnez %v395_v41 }
  0x24   : > { %295 = vperm.xlu0 %1026, %v260_v8   ;;  %v422_v51 = vunpack.c.0.s8 %v414_v44  ;;  %v415_v52 = vsel %vm407_vm5, 16843009, %v1154_v0  ;;  %v403_v53 = vpack.c.b8 %v402_v42, %v402_v42  ;;  %v418_v54 = vsel %vm410_vm6, 16843009, %v1154_v0 }
  0x25   : > { %v397_v55 = vpack.c.b8 %v396_v43, %v396_v43  ;;  %v404_v56 = vpack.c.b16 %v389_v46, %v388_v45  ;;  %v416_v59 = vsel %vm408_vm7, 16843009, %v1154_v0  ;;  %vm411_vm8 = vnez %v401_v49  ;;  %v1029_v49 = vld [vmem:[%s1633_s3 + $0x38] sm:$0xff]  }
  0x26   : > { %v423_v60 = vunpack.c.1.s8 %v414_v44  ;;  %v424_v61 = vunpack.c.0.s8 %v415_v52  ;;  %v425_v62 = vunpack.c.1.s8 %v415_v52  ;;  %vm1261_vm9 = vcmp.ne.s32.totalorder %v422_v51, 0 }
  0x27   : > { %v430_v1 = vunpack.c.0.s8 %v418_v54  ;;  %v431_v2 = vunpack.c.1.s8 %v418_v54  ;;  %vm412_vm10 = vnez %v403_v53  ;;  %v426_v5 = vunpack.c.0.s8 %v416_v59 }
  0x28   : > { %v419_v6 = vsel %vm411_vm8, 16843009, %v1154_v0  ;;  %vm1266_vm11 = vnez %v397_v55  ;;  %v405_v8 = vpack.c.b8 %v404_v56, %v404_v56  ;;  %vm1276_vm12 = vcmp.ne.s32.totalorder %v423_v60, 0 }
  0x29   : > { %vm1280_vm13 = vcmp.ne.s32.totalorder %v424_v61, 0  ;;  %v427_v15 = vunpack.c.1.s8 %v416_v59  ;;  %v420_v16 = vsel %vm412_vm10, 16843009, %v1154_v0  ;;  %vm1285_vm14 = vcmp.ne.s32.totalorder %v430_v1, 0 }
  0x2a   : > { %v432_v20 = vunpack.c.0.s8 %v419_v6  ;;  %vm1289_vm15 = vcmp.ne.s32.totalorder %v425_v62, 0  ;;  %vm1293_vm0 = vcmp.ne.s32.totalorder %v431_v2, 0  ;;  %vm1297_vm1 = vcmp.ne.s32.totalorder %v426_v5, 0 }
  0x2b   : > { %v433_v27 = vunpack.c.1.s8 %v419_v6  ;;  %v417_v28 = vsel %vm1266_vm11, 16843009, %v1154_v0  ;;  %vm413_vm2 = vnez %v405_v8  ;;  %v434_v31 = vunpack.c.0.s8 %v420_v16 }
  0x2c   : > { %v435_v32 = vunpack.c.1.s8 %v420_v16  ;;  %vm1313_vm3 = vcmp.ne.s32.totalorder %v427_v15, 0  ;;  %vm1317_vm4 = vcmp.ne.s32.totalorder %v432_v20, 0  ;;  %v428_v40 = vunpack.c.0.s8 %v417_v28 }
  0x2d   : > { %v429_v41 = vunpack.c.1.s8 %v417_v28  ;;  %v1322_v42 = vsel %vm413_vm2, 16843009, %v1154_v0  ;;  %vm1325_vm5 = vcmp.ne.s32.totalorder %v433_v27, 0  ;;  %vm1333_vm6 = vcmp.ne.s32.totalorder %v434_v31, 0 }
  0x2e   : > { %vm1343_vm7 = vcmp.ne.s32.totalorder %v435_v32, 0  ;;  %vm1351_vm8 = vcmp.ne.s32.totalorder %v428_v40, 0 }
  0x2f   : > { %vm1355_vm10 = vcmp.ne.s32.totalorder %v429_v41, 0 }
  0x92   : > { %v286_v3 = vpop.permute.xlu1 %285 }
  0x93   : > { %v266_v4 = vpop.permute.xlu0 %265  ;;  %v322_v9 = vadd.f32 %v1256_v57, %v286_v3  ;;  %v1272_v10 = vadd.f32 %v1258_v58, %v286_v3 }
  0x94   : > { %v314_v11 = vadd.f32 %v1256_v57, %v266_v4  ;;  %v315_v12 = vadd.f32 %v1258_v58, %v266_v4 }
  0x95   : > { %v338_v17 = vmul.f32 0.2, %v322_v9  ;;  %v339_v29 = vmul.f32 0.2, %v1272_v10 }
  0x96   : > { %v330_v18 = vmul.f32 0.2, %v314_v11  ;;  %v331_v21 = vmul.f32 0.2, %v315_v12  ;;  %v291_v22 = vpop.permute.xlu1 %290 }
  0x97   : > { %v271_v23 = vpop.permute.xlu0 %270  ;;  %v1306_v30 = vadd.f32 %v1256_v57, %v291_v22  ;;  %v1309_v34 = vadd.f32 %v1258_v58, %v291_v22  ;;  %v354_v38 = vmax.f32 %v322_v9, %v338_v17  ;;  %v355_v54 = vmax.f32 %v1272_v10, %v339_v29 }
  0x98   : > { %v346_v33 = vmax.f32 %v314_v11, %v330_v18  ;;  %v316_v35 = vadd.f32 %v1256_v57, %v271_v23  ;;  %v317_v36 = vadd.f32 %v1258_v58, %v271_v23  ;;  %v347_v43 = vmax.f32 %v315_v12, %v331_v21 }
  0x99   : > { %v340_v44 = vmul.f32 0.2, %v1306_v30  ;;  %v341_v50 = vmul.f32 0.2, %v1309_v34  ;;  %v1349_v2 = vsel %vm1285_vm14, %v354_v38, -1e+30 }
  0x9a   : > { %v332_v45 = vmul.f32 0.2, %v316_v35  ;;  %v333_v46 = vmul.f32 0.2, %v317_v36  ;;  %v281_v47 = vpop.permute.xlu1 %280  ;;  %v1341_v59 = vsel %vm1261_vm9, %v346_v33, -1e+30 }
  0x9b   : > { %v276_v48 = vpop.permute.xlu0 %275  ;;  %v320_v51 = vadd.f32 %v1256_v57, %v281_v47  ;;  %v321_v52 = vadd.f32 %v1258_v58, %v281_v47  ;;  %v356_v63 = vmax.f32 %v1306_v30, %v340_v44  ;;  %v1362_v7 = vsel %vm1276_vm12, %v347_v43, -1e+30 }
  0x9c   : > { %v318_v0 = vadd.f32 %v1256_v57, %v276_v48  ;;  %v348_v55 = vmax.f32 %v316_v35, %v332_v45  ;;  %v319_v56 = vadd.f32 %v1258_v58, %v276_v48  ;;  %v349_v61 = vmax.f32 %v317_v36, %v333_v46  ;;  %v1028_v48 = vld [vmem:[%s1633_s3 + $0x78] sm:$0xff]  }
  0x9d   : > { %v336_v62 = vmul.f32 0.2, %v320_v51  ;;  %v337_v5 = vmul.f32 0.2, %v321_v52  ;;  %v357_v10 = vmax.f32 %v1309_v34, %v341_v50  ;;  %v470_v12 = vmax.f32 %v1341_v59, %v1362_v7  ;;  %v1030_v50 = vld [vmem:[%s1633_s3 + $0x70] sm:$0xff]   ;;  %928 = vmatprep.subr.bf16.mxu0 %v1028_v48  ;;  %968 = vmatprep.subr.bf16.mxu1 %v1028_v48 }
  0x9e   : > { %v334_v1 = vmul.f32 0.2, %v318_v0  ;;  %v335_v6 = vmul.f32 0.2, %v319_v56  ;;  %v301_v8 = vpop.permute.xlu1 %300  ;;  %v1369_v15 = vsel %vm1280_vm13, %v348_v55, -1e+30  ;;  %v436_v34 = vunpack.c.0.s8 %v1322_v42  ;;  %929 = vmatpush3.bf16.msra.mxu0 %v1029_v49  ;;  %976 = vmatpush3.bf16.msra.mxu1 %v1029_v49 }
  0x9f   : > { %v296_v9 = vpop.permute.xlu0 %295  ;;  %v328_v17 = vadd.f32 %v1256_v57, %v301_v8  ;;  %v329_v18 = vadd.f32 %v1258_v58, %v301_v8  ;;  %471 = vmax.xlane.f32.xlu0 %v470_v12  ;;  %v1377_v20 = vsel %vm1289_vm15, %v349_v61, -1e+30  ;;  %v1381_v21 = vsel %vm1293_vm0, %v355_v54, -1e+30  ;;  %930 = vmatprep.subr.bf16.mxu0 %v1030_v50  ;;  %v1033_v49 = vld [vmem:[%s1633_s3 + $0x28] sm:$0xff]  }
  0xa0   : > { %v350_v11 = vmax.f32 %v318_v0, %v334_v1  ;;  %v351_v16 = vmax.f32 %v319_v56, %v335_v6  ;;  %v326_v13 = vadd.f32 %v1256_v57, %v296_v9  ;;  %v327_v19 = vadd.f32 %v1258_v58, %v296_v9  ;;  %969 = vmatprep.subr.bf16.mxu1 %v1030_v50  ;;  %v1034_v50 = vld [vmem:[%s1633_s3 + $0x60] sm:$0xff]  }
  0xa1   : > { %v352_v22 = vmax.f32 %v320_v51, %v336_v62  ;;  %v353_v23 = vmax.f32 %v321_v52, %v337_v5  ;;  %v473_v57 = vmax.f32 %v1369_v15, %v1377_v20  ;;  %v344_v28 = vmul.f32 0.2, %v328_v17  ;;  %v1031_v51 = vld [vmem:[%s1633_s3 + $0x30] sm:$0xff]   ;;  %v1032_v52 = vld [vmem:[%s1633_s3 + $0x68] sm:$0xff]  }
  0xa2   : > { %v1385_v14 = vsel %vm1297_vm1, %v350_v11, -1e+30  ;;  %v342_v27 = vmul.f32 0.2, %v326_v13  ;;  %v343_v58 = vmul.f32 0.2, %v327_v19  ;;  %v482_v24 = vmax.f32 %v1349_v2, %v1381_v21  ;;  %931 = vmatpush3.bf16.msra.mxu0 %v1031_v51  ;;  %977 = vmatpush3.bf16.msra.mxu1 %v1031_v51 }
  0xa3   : > { %v1393_v25 = vsel %vm1313_vm3, %v351_v16, -1e+30  ;;  %v345_v29 = vmul.f32 0.2, %v329_v18  ;;  %474 = vmax.xlane.f32.xlu1 %v473_v57  ;;  %v1399_v31 = vsel %vm1317_vm4, %v356_v63, -1e+30  ;;  %v437_v35 = vunpack.c.1.s8 %v1322_v42  ;;  %932 = vmatprep.subr.bf16.mxu0 %v1032_v52 }
  0xa4   : > { %v358_v30 = vmax.f32 %v326_v13, %v342_v27  ;;  %v476_v26 = vmax.f32 %v1385_v14, %v1393_v25  ;;  %v359_v32 = vmax.f32 %v327_v19, %v343_v58  ;;  %483 = vmax.xlane.f32.xlu0 %v482_v24  ;;  %v1403_v33 = vsel %vm1325_vm5, %v357_v10, -1e+30  ;;  %970 = vmatprep.subr.bf16.mxu1 %v1032_v52 }
  0xa5   : > { %v360_v37 = vmax.f32 %v328_v17, %v344_v28  ;;  %v485_v38 = vmax.f32 %v1399_v31, %v1403_v33  ;;  %v361_v40 = vmax.f32 %v329_v18, %v345_v29  ;;  %v1421_v42 = vsel %vm1351_vm8, %v352_v22, -1e+30 }
  0xa6   : > { %v1409_v36 = vsel %vm1333_vm6, %v358_v30, -1e+30  ;;  %v1415_v39 = vsel %vm1343_vm7, %v359_v32, -1e+30  ;;  %v1425_v43 = vsel %vm1355_vm10, %v353_v23, -1e+30  ;;  %933 = vmatpush3.bf16.msra.mxu0 %v1033_v49  ;;  %978 = vmatpush3.bf16.msra.mxu1 %v1033_v49 }
  0xa7   : > { %477 = vmax.xlane.f32.xlu1 %v476_v26  ;;  %v488_v41 = vmax.f32 %v1409_v36, %v1415_v39  ;;  %vm452_vm9 = vcmp.ne.s32.totalorder %v436_v34, 0  ;;  %vm453_vm11 = vcmp.ne.s32.totalorder %v437_v35, 0  ;;  %v479_v44 = vmax.f32 %v1421_v42, %v1425_v43  ;;  %934 = vmatprep.subr.bf16.mxu0 %v1034_v50 }
  0xa8   : > { %486 = vmax.xlane.f32.xlu0 %v485_v38  ;;  %v1429_v45 = vsel %vm452_vm9, %v360_v37, -1e+30  ;;  %v1431_v46 = vsel %vm453_vm11, %v361_v40, -1e+30  ;;  %971 = vmatprep.subr.bf16.mxu1 %v1034_v50 }
  0xa9   : > { %v491_v47 = vmax.f32 %v1429_v45, %v1431_v46 }
  0xab   : > { %489 = vmax.xlane.f32.xlu1 %v488_v41 }
  0xac   : > { %480 = vmax.xlane.f32.xlu0 %v479_v44 }
  0xb0   : > { %492 = vmax.xlane.f32.xlu0 %v491_v47 }
 0x128   : > { %v472_v0 = vpop.xlane.xlu0 %471 }
 0x129   : > { %v494_v53 = vsub.f32 %v1341_v59, %v472_v0  ;;  %v495_v54 = vsub.f32 %v1362_v7, %v472_v0 }
 0x12b   : > { %v510_v55 = vmul.f32 1.442695, %v494_v53  ;;  %v512_v56 = vmul.f32 1.442695, %v495_v54  ;;  %v1035_v54 = vld [vmem:[%s1633_s3 + $0x20] sm:$0xff]  }
 0x12c   : > { %v475_v60 = vpop.xlane.xlu1 %474  ;;  %935 = vmatpush3.bf16.msra.mxu0 %v1035_v54  ;;  %979 = vmatpush3.bf16.msra.mxu1 %v1035_v54 }
 0x12d   : > { %v496_v61 = vsub.f32 %v1369_v15, %v475_v60  ;;  %v497_v62 = vsub.f32 %v1377_v20, %v475_v60  ;;  %v484_v1 = vpop.xlane.xlu0 %483  ;;  %1044 = vpow2.f32 %v510_v55  ;;  %v1036_v55 = vld [vmem:[%s1633_s3 + $0x58] sm:$0xff]   ;;  %v1038_v60 = vld [vmem:[%s1633_s3 + $0x50] sm:$0xff]  }
 0x12e   : > { %v502_v3 = vsub.f32 %v1349_v2, %v484_v1  ;;  %v503_v4 = vsub.f32 %v1381_v21, %v484_v1  ;;  %1046 = vpow2.f32 %v512_v56  ;;  %936 = vmatprep.subr.bf16.mxu0 %v1036_v55  ;;  %v1037_v56 = vld [vmem:[%s1633_s3 + $0x18] sm:$0xff]   ;;  %972 = vmatprep.subr.bf16.mxu1 %v1036_v55  ;;  %v1041_v1 = vld [vmem:[%s1633_s3 + $0x8] sm:$0xff]  }
 0x12f   : > { %v514_v63 = vmul.f32 1.442695, %v496_v61  ;;  %v516_v5 = vmul.f32 1.442695, %v497_v62  ;;  %v1039_v61 = vld [vmem:[%s1633_s3 + $0x10] sm:$0xff]   ;;  %v1040_v62 = vld [vmem:[%s1633_s3 + $0x48] sm:$0xff]  }
 0x130   : > { %v526_v6 = vmul.f32 1.442695, %v502_v3  ;;  %v528_v59 = vmul.f32 1.442695, %v503_v4  ;;  %v478_v8 = vpop.xlane.xlu1 %477  ;;  %937 = vmatpush3.bf16.msra.mxu0 %v1037_v56  ;;  %980 = vmatpush3.bf16.msra.mxu1 %v1037_v56  ;;  %v1042_v3 = vld [vmem:[%s1633_s3 + $0x40] sm:$0xff]  }
 0x131   : > { %1048 = vpow2.f32 %v514_v63  ;;  %v498_v7 = vsub.f32 %v1385_v14, %v478_v8  ;;  %v499_v9 = vsub.f32 %v1393_v25, %v478_v8  ;;  %v487_v10 = vpop.xlane.xlu0 %486  ;;  %938 = vmatprep.subr.bf16.mxu0 %v1038_v60  ;;  %973 = vmatprep.subr.bf16.mxu1 %v1038_v60  ;;  %v1043_v4 = vld [vmem:[%s1633_s3] sm:$0xff]  }
 0x132   : > { %1050 = vpow2.f32 %v516_v5  ;;  %v504_v11 = vsub.f32 %v1399_v31, %v487_v10  ;;  %v505_v12 = vsub.f32 %v1403_v33, %v487_v10 }
 0x133   : > { %1052 = vpow2.f32 %v526_v6  ;;  %v518_v2 = vmul.f32 1.442695, %v498_v7  ;;  %v520_v15 = vmul.f32 1.442695, %v499_v9 }
 0x134   : > { %1054 = vpow2.f32 %v528_v59  ;;  %v530_v16 = vmul.f32 1.442695, %v504_v11  ;;  %v532_v17 = vmul.f32 1.442695, %v505_v12  ;;  %v490_v18 = vpop.xlane.xlu1 %489  ;;  %939 = vmatpush3.bf16.msra.mxu0 %v1039_v61  ;;  %981 = vmatpush3.bf16.msra.mxu1 %v1039_v61 }
 0x135   : > { %1056 = vpow2.f32 %v518_v2  ;;  %v506_v13 = vsub.f32 %v1409_v36, %v490_v18  ;;  %v507_v19 = vsub.f32 %v1415_v39, %v490_v18  ;;  %v481_v20 = vpop.xlane.xlu0 %480  ;;  %940 = vmatprep.subr.bf16.mxu0 %v1040_v62  ;;  %974 = vmatprep.subr.bf16.mxu1 %v1040_v62 }
 0x136   : > { %1058 = vpow2.f32 %v520_v15  ;;  %v500_v21 = vsub.f32 %v1421_v42, %v481_v20  ;;  %v501_v14 = vsub.f32 %v1425_v43, %v481_v20 }
 0x137   : > { %1060 = vpow2.f32 %v530_v16  ;;  %v534_v22 = vmul.f32 1.442695, %v506_v13  ;;  %v536_v23 = vmul.f32 1.442695, %v507_v19 }
 0x138   : > { %1062 = vpow2.f32 %v532_v17  ;;  %v522_v27 = vmul.f32 1.442695, %v500_v21  ;;  %v524_v57 = vmul.f32 1.442695, %v501_v14  ;;  %941 = vmatpush3.bf16.msra.mxu0 %v1041_v1  ;;  %982 = vmatpush3.bf16.msra.mxu1 %v1041_v1 }
 0x139   : > { %1064 = vpow2.f32 %v534_v22  ;;  %v493_v28 = vpop.xlane.xlu0 %492  ;;  %942 = vmatprep.subr.bf16.mxu0 %v1042_v3  ;;  %975 = vmatprep.subr.bf16.mxu1 %v1042_v3 }
 0x13a   : > { %1066 = vpow2.f32 %v536_v23  ;;  %v508_v58 = vsub.f32 %v1429_v45, %v493_v28  ;;  %v509_v24 = vsub.f32 %v1431_v46, %v493_v28  ;;  %v1466_v25 = vpop.eup %1044 }
 0x13b   : > { %1068 = vpow2.f32 %v522_v27  ;;  %v1468_v29 = vpop.eup %1046 }
 0x13c   : > { %1070 = vpow2.f32 %v524_v57  ;;  %v538_v30 = vmul.f32 1.442695, %v508_v58  ;;  %v540_v26 = vmul.f32 1.442695, %v509_v24  ;;  %v542_v31 = vadd.f32 %v1468_v29, %v1466_v25  ;;  %943 = vmatpush3.bf16.msra.mxu0 %v1043_v4  ;;  %983 = vmatpush3.bf16.msra.mxu1 %v1043_v4 }
 0x13e   : > { %v1472_v32 = vpop.eup %1048  ;;  %1072 = vpow2.f32 %v538_v30  ;;  %543 = vadd.xlane.f32.xlu1 %v542_v31 }
 0x13f   : > { %v1474_v33 = vpop.eup %1050  ;;  %1074 = vpow2.f32 %v540_v26 }
 0x140   : > { %v1476_v34 = vpop.eup %1052  ;;  %v545_v35 = vadd.f32 %v1474_v33, %v1472_v32 }
 0x141   : > { %v1480_v36 = vpop.eup %1054 }
 0x142   : > { %v1482_v37 = vpop.eup %1056  ;;  %546 = vadd.xlane.f32.xlu0 %v545_v35  ;;  %v554_v38 = vadd.f32 %v1480_v36, %v1476_v34 }
 0x143   : > { %v1486_v39 = vpop.eup %1058 }
 0x144   : > { %v1488_v40 = vpop.eup %1060  ;;  %555 = vadd.xlane.f32.xlu1 %v554_v38  ;;  %v548_v41 = vadd.f32 %v1486_v39, %v1482_v37 }
 0x145   : > { %v1492_v42 = vpop.eup %1062 }
 0x146   : > { %v1494_v43 = vpop.eup %1064  ;;  %v557_v44 = vadd.f32 %v1492_v42, %v1488_v40 }
 0x147   : > { %v1498_v45 = vpop.eup %1066 }
 0x148   : > { %v1500_v46 = vpop.eup %1068  ;;  %549 = vadd.xlane.f32.xlu1 %v548_v41  ;;  %558 = vadd.xlane.f32.xlu0 %v557_v44  ;;  %v560_v47 = vadd.f32 %v1498_v45, %v1494_v43  ;;  %v904_v41 = vld [vmem:[%s1634_s4] ss:$0 sm:$0xff] }
 0x149   : > { %v1504_v48 = vpop.eup %1070 }
 0x14a   : > { %v551_v51 = vadd.f32 %v1504_v48, %v1500_v46 }
 0x14b   : > { %v1514_v52 = vpop.eup %1072 }
 0x14c   : > { %v1516_v0 = vpop.eup %1074  ;;  %561 = vadd.xlane.f32.xlu1 %v560_v47  ;;  %552 = vadd.xlane.f32.xlu0 %v551_v51 }
 0x14d   : > { %v563_v53 = vadd.f32 %v1516_v0, %v1514_v52 }
 0x150   : > { %564 = vadd.xlane.f32.xlu0 %v563_v53 }
 0x1c7   : > { %v544_v63 = vpop.xlane.xlu1 %543 }
 0x1c8   : > { %1076 = vrcp.f32 %v544_v63 }
 0x1cb   : > { %v547_v5 = vpop.xlane.xlu0 %546 }
 0x1cc   : > { %1078 = vrcp.f32 %v547_v5 }
 0x1cd   : > { %v556_v6 = vpop.xlane.xlu1 %555 }
 0x1ce   : > { %1080 = vrcp.f32 %v556_v6 }
 0x1d1   : > { %v550_v59 = vpop.xlane.xlu1 %549  ;;  %v559_v8 = vpop.xlane.xlu0 %558 }
 0x1d2   : > { %1082 = vrcp.f32 %v559_v8 }
 0x1d3   : > { %1084 = vrcp.f32 %v550_v59 }
 0x1d5   : > { %v562_v7 = vpop.xlane.xlu1 %561  ;;  %v553_v9 = vpop.xlane.xlu0 %552 }
 0x1d6   : > { %v1077_v10 = vpop.eup %1076  ;;  %1086 = vrcp.f32 %v553_v9 }
 0x1d7   : > { %1088 = vrcp.f32 %v562_v7  ;;  %v575_v2 = vmul.f32 %v1077_v10, %v1468_v29  ;;  %v574_v16 = vmul.f32 %v1077_v10, %v1466_v25 }
 0x1d9   : > { %v1079_v11 = vpop.eup %1078  ;;  %v565_v12 = vpop.xlane.xlu0 %564 }
 0x1da   : > { %1090 = vrcp.f32 %v565_v12  ;;  %v577_v15 = vmul.f32 %v1079_v11, %v1474_v33  ;;  %v576_v17 = vmul.f32 %v1079_v11, %v1472_v32 }
 0x1db   : > { %v1081_v19 = vpop.eup %1080 }
 0x1dc   : > { %v591_v18 = vpack.c.bf16 %v577_v15, %v575_v2  ;;  %v590_v13 = vpack.c.bf16 %v576_v17, %v574_v16  ;;  %v583_v21 = vmul.f32 %v1081_v19, %v1480_v36  ;;  %v582_v22 = vmul.f32 %v1081_v19, %v1476_v34 }
 0x1de   : > { %765 = vmatprep.mubr.bf16.mxu0 %v591_v18 }
 0x1df   : > { %766 = vmatmul.mubr.bf16.vlgmr.msra.gmra.mxu0 %v590_v13  ;;  %v1083_v20 = vpop.eup %1082 }
 0x1e0   : > { %v585_v14 = vmul.f32 %v1083_v20, %v1492_v42  ;;  %v584_v23 = vmul.f32 %v1083_v20, %v1488_v40  ;;  %v1085_v27 = vpop.eup %1084 }
 0x1e1   : > { %v579_v25 = vmul.f32 %v1085_v27, %v1486_v39  ;;  %v578_v30 = vmul.f32 %v1085_v27, %v1482_v37 }
 0x1e2   : > { %v595_v57 = vpack.c.bf16 %v585_v14, %v583_v21  ;;  %v594_v28 = vpack.c.bf16 %v584_v23, %v582_v22 }
 0x1e3   : > { %v1087_v58 = vpop.eup %1086 }
 0x1e4   : > { %v1089_v24 = vpop.eup %1088  ;;  %781 = vmatprep.mubr.bf16.mxu1 %v595_v57  ;;  %v581_v29 = vmul.f32 %v1087_v58, %v1504_v48  ;;  %v580_v26 = vmul.f32 %v1087_v58, %v1500_v46 }
 0x1e5   : > { %782 = vmatmul.mubr.bf16.vlgmr.msra.gmra.mxu1 %v594_v28  ;;  %v587_v34 = vmul.f32 %v1089_v24, %v1498_v45  ;;  %v586_v36 = vmul.f32 %v1089_v24, %v1494_v43 }
 0x1e6   : > { %v593_v32 = vpack.c.bf16 %v581_v29, %v579_v25  ;;  %v592_v33 = vpack.c.bf16 %v580_v26, %v578_v30 }
 0x1e7   : > { %v1091_v31 = vpop.eup %1090 }
 0x1e8   : > { %v589_v35 = vmul.f32 %v1091_v31, %v1516_v0  ;;  %v588_v38 = vmul.f32 %v1091_v31, %v1514_v52  ;;  %773 = vmatprep.mubr.bf16.mxu0 %v593_v32 }
 0x1e9   : > { %774 = vmatmul.mubr.bf16.gmra.mxu0 %v592_v33 }
 0x1ea   : > { %v597_v39 = vpack.c.bf16 %v589_v35, %v587_v34  ;;  %v596_v37 = vpack.c.bf16 %v588_v38, %v586_v36 }
 0x1ec   : > { %789 = vmatprep.mubr.bf16.mxu1 %v597_v39 }
 0x1ed   : > { %790 = vmatmul.mubr.bf16.gmra.mxu1 %v596_v37 }
 0x29f   : > { %v944_v40 = vpop.f32.mrf.mxu0 }
 0x2a1   : > { %v945_v42 = vpop.f32.mrf.mxu0 }
 0x2a2   : > { %v946_v44 = vadd.f32 %v945_v42, %v944_v40 }
 0x2a3   : > { %v947_v45 = vpop.f32.mrf.mxu0 }
 0x2a4   : > { %v768_v43 = vadd.f32 %v946_v44, %v904_v41 }
 0x2a5   : > { %v948_v46 = vpop.f32.mrf.mxu0  ;;  %v956_v47 = vpop.f32.mrf.mxu1 }
 0x2a6   : > { %798 = vst [vmem:[%s1569_s30] sm:$0xff] %v768_v43  ;;  %v949_v48 = vadd.f32 %v948_v46, %v947_v45 }
 0x2a7   : > { %v957_v50 = vpop.f32.mrf.mxu1 }
 0x2a8   : > { %v771_v49 = vadd.f32 %v949_v48, %v904_v41  ;;  %v958_v51 = vadd.f32 %v957_v50, %v956_v47 }
 0x2a9   : > { %v950_v52 = vpop.f32.mrf.mxu0  ;;  %v959_v0 = vpop.f32.mrf.mxu1 }
 0x2aa   : > { %799 = vst [vmem:[%s1569_s30 + $0x8] sm:$0xff] %v771_v49  ;;  %v784_v53 = vadd.f32 %v958_v51, %v904_v41 }
 0x2ab   : > { %v951_v54 = vpop.f32.mrf.mxu0  ;;  %v960_v55 = vpop.f32.mrf.mxu1 }
 0x2ac   : > { %802 = vst [vmem:[%s1569_s30 + $0x20] sm:$0xff] %v784_v53  ;;  %v952_v56 = vadd.f32 %v951_v54, %v950_v52  ;;  %v961_v60 = vadd.f32 %v960_v55, %v959_v0 }
 0x2ad   : > { %v953_v61 = vpop.f32.mrf.mxu0  ;;  %v962_v62 = vpop.f32.mrf.mxu1 }
 0x2ae   : > { %v776_v1 = vadd.f32 %v952_v56, %v904_v41  ;;  %v787_v3 = vadd.f32 %v961_v60, %v904_v41 }
 0x2af   : > { %v954_v4 = vpop.f32.mrf.mxu0  ;;  %v963_v63 = vpop.f32.mrf.mxu1 }
 0x2b0   : > { %800 = vst [vmem:[%s1569_s30 + $0x10] sm:$0xff] %v776_v1  ;;  %803 = vst [vmem:[%s1569_s30 + $0x28] sm:$0xff] %v787_v3  ;;  %v955_v5 = vadd.f32 %v954_v4, %v953_v61  ;;  %v964_v6 = vadd.f32 %v963_v63, %v962_v62 }
 0x2b1   : > { %v965_v59 = vpop.f32.mrf.mxu1 }
 0x2b2   : > { %v779_v8 = vadd.f32 %v955_v5, %v904_v41  ;;  %v792_v7 = vadd.f32 %v964_v6, %v904_v41 }
 0x2b3   : > { %v966_v9 = vpop.f32.mrf.mxu1 }
 0x2b4   : > { %801 = vst [vmem:[%s1569_s30 + $0x18] sm:$0xff] %v779_v8  ;;  %804 = vst [vmem:[%s1569_s30 + $0x30] sm:$0xff] %v792_v7  ;;  %v967_v10 = vadd.f32 %v966_v9, %v965_v59 }
 0x2b6   : > { %v795_v11 = vadd.f32 %v967_v10, %v904_v41 }
 0x2b8   : > { %805 = vst [vmem:[%s1569_s30 + $0x38] sm:$0xff] %v795_v11 }
 0x2b9   : > { %1105 = shalt.err (!%p1102_p4)
}
 0x2ba   : > { %s1106_s15 = scalar_lea.hbm %s1583_s10, 1024  ;;  %s1110_s23 = scalar_lea.hbm %s1635_s5, 4096 }
 0x2bb   : > { %p1107_p7 = scmp.ne.s32.totalorder %s1583_s10, %s1106_s15  ;;  %p1111_p10 = scmp.lt.s32.totalorder %s1583_s10, %s1635_s5 }
 0x2bc   : > { %p1112_p11 = scmp.lt.s32.totalorder %s1110_s23, %s1106_s15 }
 0x2bd   : > { %p1108_p8 = pnand %p1107_p7, %p1226_p5 }
 0x2be   : > { %p1113_p12 = por %p1112_p11, %p1111_p10 }
 0x2bf   : > { %p1109_p9 = pneg %p1108_p8 }
 0x2c1   : > { %p1114_p13 = pnand %p1113_p12, %p1109_p9 }
 0x2c3   : > { %1117 = shalt.err (!%p1114_p13)
}
 0x2c4   : > { %s1156_s30 = smov 128   ;;  %s1157_s6 = smov 8  }
 0x2c5   : > { %984 = dma.vmem_to_hbm [thread:$0]  (%p1226_p5), %s1585_s7, 1024, %s1583_s10, %s1590_s11, %s1156_s30, %s1156_s30, %s1157_s6  }
 0x2c6 PF: > { %p990_p0 = scmp.ge.s32.totalorder %s1152_s21, 2  ;;  %s835_s8 = sand.u32 1, %s1140_s18  }
 0x2c7   : > { %s836_s9 = scalar_lea.sflag [#allocation3], %s835_s8 }
 0x2c8   : > { %p987_p1 = pnand %p990_p0, %p1230_p6 }
 0x2ca   : > { %p988_p2 = pneg %p987_p1 }
 0x2cc   : > { %1135 = dma.done.wait (%p988_p2), %s836_s9, 1024  }
 0x2cd   : > { %1137 = vsyncadd (%p988_p2), %s836_s9, 4294966272  ;;  %p15_p3 = scmp.ge.s32.totalorder %s1213_s24, 6   ;;  %s1668_s18 = smov %s1144_s19 }
 0x2ce   : > { %s1669_s19 = smov %s1148_s20  ;;  %s1670_s20 = smov %s1224_s27 }
 0x2cf   : > { %s1671_s21 = smov %s1213_s24  ;;  %17 = sbr.rel (!%p15_p3) target bundleno = 3 (0x3), region = 78 }
 0x2d4   :  { %841 = vsyncpa [#allocation3], 1 }
 0x2d5   :  { %843 = vsyncpa [#allocation3 + $0x1], 1 }

// kernel: gat_forward.6
= control target key start
LH: loop header
LB: loop body
LE: loop exit
PB: predicated region body
PF: predicated region fallthrough
CT: control target
= control target key end

     0   :  { %s793_s21 = smov 0   ;;  %s848_s0 = inlined_call_operand.vmem [shape: bf16[256,32], index: 0, kind: input, shape index: {}]   ;;  %s849_s1 = inlined_call_operand.vmem [shape: bf16[32,128], index: 1, kind: input, shape index: {}]   ;;  %s850_s2 = inlined_call_operand.vmem [shape: f32[1,128], index: 2, kind: input, shape index: {}]   ;;  %s851_s3 = inlined_call_operand.vmem [shape: f32[1,128], index: 3, kind: input, shape index: {}]   ;;  %s852_s4 = inlined_call_operand.vmem [shape: bf16[256,128], index: 4, kind: output, shape index: {0}]   ;;  %s853_s5 = inlined_call_operand.vmem [shape: f32[256,1], index: 5, kind: output, shape index: {1}]   ;;  %s854_s6 = inlined_call_operand.vmem [shape: f32[256,1], index: 6, kind: output, shape index: {2}]  }
   0x1 LB: > { %s648_s22 = sadd.s32 4294967295, %s756_s21   ;;  %p652_p0 = scmp.ge.s32.totalorder %s756_s21, 1  ;;  %s756_s21 = sphi %s793_s21, %s17_s21  }
   0x2   : > { %p218_p1 = scmp.lt.s32.totalorder %s756_s21, 5 }
   0x4   : > { %p219_p2 = pnand %p652_p0, %p218_p1 }
   0x5   : > { %s653_s25 = sshll.u32 (!%p219_p2), %s648_s22, 3 }
   0x6   : > { %222 = sbr.rel (%p219_p2) target bundleno = 382 (0x17e), region = 36  ;;  %p259_p3 = scmp.lt.s32.totalorder (!%p219_p2), %s653_s25, 31 }
   0xb   : > { %v744_v0 = vld [vmem:[%s849_s1 + $0x8] sm:$0xff]   ;;  %v745_v1 = vld [vmem:[%s849_s1] sm:$0xff]   ;;  %s856_s25 = smov (!%p259_p3, %s653_s25), 31  ;;  %vm327_vm0 = vcmask 261120   ;;  %vm476_vm1 = vcmask 7168  }
   0xc   : > { %720 = vmatprep.subr.bf16.mxu0 %v744_v0  ;;  %732 = vmatprep.subr.bf16.mxu1 %v744_v0  ;;  %s654_s28 = sshll.u32 %s856_s25, 2  ;;  %v679_v6 = vld [vmem:[%s850_s2] ss:$0 sm:$0xff]  ;;  %s658_s15 = sshll.u32 %s856_s25, 3 }
   0xd   : > { %721 = vmatpush3.bf16.msra.mxu0 %v744_v0  ;;  %734 = vmatpush3.bf16.msra.mxu1 %v744_v0  ;;  %s262_s7 = scalar_lea.vmem %s848_s0, %s654_s28  ;;  %v680_v13 = vld [vmem:[%s851_s3] ss:$0 sm:$0xff]  ;;  %s268_s14 = scalar_lea.vmem %s852_s4, %s654_s28 }
   0xe   : > { %722 = vmatprep.subr.bf16.mxu0 %v745_v1  ;;  %733 = vmatprep.subr.bf16.mxu1 %v745_v1  ;;  %v746_v2 = vld [vmem:[%s262_s7] sm:$0xff]   ;;  %v747_v3 = vld [vmem:[%s262_s7 + $0x10] sm:$0xff]   ;;  %v748_v4 = vld [vmem:[%s262_s7 + $0x8] sm:$0xff]   ;;  %s274_s18 = scalar_lea.vmem %s853_s5, %s658_s15  ;;  %s280_s22 = scalar_lea.vmem %s854_s6, %s658_s15 }
   0xf   : > { %724 = vmatprep.mubr.msk.bf16.mxu0 %vm327_vm0, %v746_v2  ;;  %728 = vmatprep.mubr.msk.bf16.mxu1 %vm327_vm0, %v747_v3  ;;  %v749_v5 = vld [vmem:[%s262_s7 + $0x18] sm:$0xff]  }
  0x11   : > { %723 = vmatpush3.bf16.msra.mxu0 %v745_v1  ;;  %735 = vmatpush3.bf16.msra.mxu1 %v745_v1 }
  0x14   : > { %725 = vmatmul.mubr.msk.bf16.vlgmr.msra.gmra.mxu0 %vm327_vm0, %v748_v4  ;;  %729 = vmatmul.mubr.msk.bf16.vlgmr.msra.gmra.mxu1 %vm327_vm0, %v749_v5 }
  0xd4   : > { %v726_v7 = vpop.f32.mrf.mxu0  ;;  %v730_v8 = vpop.f32.mrf.mxu1 }
  0xd5   : > { %v454_v9 = vmul.f32 %v726_v7, %v679_v6  ;;  %v458_v11 = vmul.f32 %v730_v8, %v679_v6  ;;  %v494_v20 = vmul.f32 %v726_v7, %v680_v13  ;;  %v498_v35 = vmul.f32 %v730_v8, %v680_v13 }
  0xd6   : > { %v374_v10 = vpop.f32.mrf.mxu0  ;;  %v390_v12 = vpop.f32.mrf.mxu1 }
  0xd7   : > { %464 = vadd.xlane.f32.xlu1 %v454_v9  ;;  %472 = vadd.xlane.f32.xlu0 %v458_v11  ;;  %v452_v25 = vmul.f32 %v679_v6, %v374_v10  ;;  %v456_v27 = vmul.f32 %v679_v6, %v390_v12  ;;  %v492_v29 = vmul.f32 %v680_v13, %v374_v10 }
  0xd8   : > { %v727_v14 = vpop.f32.mrf.mxu0  ;;  %v731_v16 = vpop.f32.mrf.mxu1  ;;  %v496_v31 = vmul.f32 %v680_v13, %v390_v12 }
  0xd9   : > { %v699_v15 = vpack.c.bf16 %v727_v14, %v726_v7  ;;  %v455_v17 = vmul.f32 %v727_v14, %v679_v6  ;;  %v709_v18 = vpack.c.bf16 %v731_v16, %v730_v8  ;;  %v459_v24 = vmul.f32 %v731_v16, %v679_v6 }
  0xda   : > { %v377_v19 = vpop.f32.mrf.mxu0  ;;  %v393_v22 = vpop.f32.mrf.mxu1  ;;  %v495_v26 = vmul.f32 %v727_v14, %v680_v13  ;;  %v499_v34 = vmul.f32 %v731_v16, %v680_v13 }
  0xdb   : > { %711 = vst [vmem:[%s268_s14 + $0x8] sm:$0xff] %v699_v15   ;;  %v694_v21 = vpack.c.bf16 %v377_v19, %v374_v10  ;;  %466 = vadd.xlane.f32.xlu1 %v455_v17  ;;  %713 = vst [vmem:[%s268_s14 + $0x18] sm:$0xff] %v709_v18   ;;  %v704_v23 = vpack.c.bf16 %v393_v22, %v390_v12  ;;  %504 = vadd.xlane.f32.xlu0 %v494_v20 }
  0xdc   : > { %v457_v28 = vmul.f32 %v679_v6, %v393_v22  ;;  %v493_v30 = vmul.f32 %v680_v13, %v377_v19  ;;  %v497_v32 = vmul.f32 %v680_v13, %v393_v22  ;;  %v453_v33 = vmul.f32 %v679_v6, %v377_v19 }
  0xdd   : > { %695 = vst [vmem:[%s268_s14] sm:$0xff] %v694_v21   ;;  %712 = vst [vmem:[%s268_s14 + $0x10] sm:$0xff] %v704_v23  }
  0xdf   : > { %474 = vadd.xlane.f32.xlu1 %v459_v24  ;;  %460 = vadd.xlane.f32.xlu0 %v452_v25 }
  0xe3   : > { %506 = vadd.xlane.f32.xlu1 %v495_v26  ;;  %468 = vadd.xlane.f32.xlu0 %v456_v27 }
  0xe7   : > { %470 = vadd.xlane.f32.xlu1 %v457_v28  ;;  %500 = vadd.xlane.f32.xlu0 %v492_v29 }
  0xeb   : > { %502 = vadd.xlane.f32.xlu1 %v493_v30  ;;  %508 = vadd.xlane.f32.xlu0 %v496_v31 }
  0xef   : > { %510 = vadd.xlane.f32.xlu1 %v497_v32  ;;  %462 = vadd.xlane.f32.xlu0 %v453_v33 }
  0xf3   : > { %514 = vadd.xlane.f32.xlu1 %v499_v34  ;;  %512 = vadd.xlane.f32.xlu0 %v498_v35 }
 0x160   : > { %v465_v36 = vpop.xlane.xlu1 %464  ;;  %v473_v37 = vpop.xlane.xlu0 %472 }
 0x161   : > { %479 = vst.msk [vmem:[%s274_s18 + $0x10] sm:$0xff] %vm476_vm1, %v465_v36  ;;  %483 = vst.msk [vmem:[%s274_s18 + $0x30] sm:$0xff] %vm476_vm1, %v473_v37 }
 0x164   : > { %v467_v38 = vpop.xlane.xlu1 %466  ;;  %v505_v39 = vpop.xlane.xlu0 %504 }
 0x165   : > { %480 = vst.msk [vmem:[%s274_s18 + $0x18] sm:$0xff] %vm476_vm1, %v467_v38  ;;  %518 = vst.msk [vmem:[%s280_s22 + $0x10] sm:$0xff] %vm476_vm1, %v505_v39 }
 0x168   : > { %v475_v40 = vpop.xlane.xlu1 %474  ;;  %v461_v41 = vpop.xlane.xlu0 %460 }
 0x169   : > { %484 = vst.msk [vmem:[%s274_s18 + $0x38] sm:$0xff] %vm476_vm1, %v475_v40  ;;  %477 = vst.msk [vmem:[%s274_s18] sm:$0xff] %vm476_vm1, %v461_v41 }
 0x16c   : > { %v507_v42 = vpop.xlane.xlu1 %506  ;;  %v469_v43 = vpop.xlane.xlu0 %468 }
 0x16d   : > { %519 = vst.msk [vmem:[%s280_s22 + $0x18] sm:$0xff] %vm476_vm1, %v507_v42  ;;  %481 = vst.msk [vmem:[%s274_s18 + $0x20] sm:$0xff] %vm476_vm1, %v469_v43 }
 0x170   : > { %v471_v44 = vpop.xlane.xlu1 %470  ;;  %v501_v45 = vpop.xlane.xlu0 %500 }
 0x171   : > { %482 = vst.msk [vmem:[%s274_s18 + $0x28] sm:$0xff] %vm476_vm1, %v471_v44  ;;  %516 = vst.msk [vmem:[%s280_s22] sm:$0xff] %vm476_vm1, %v501_v45 }
 0x174   : > { %v503_v46 = vpop.xlane.xlu1 %502  ;;  %v509_v47 = vpop.xlane.xlu0 %508 }
 0x175   : > { %517 = vst.msk [vmem:[%s280_s22 + $0x8] sm:$0xff] %vm476_vm1, %v503_v46  ;;  %520 = vst.msk [vmem:[%s280_s22 + $0x20] sm:$0xff] %vm476_vm1, %v509_v47 }
 0x178   : > { %v511_v48 = vpop.xlane.xlu1 %510  ;;  %v463_v49 = vpop.xlane.xlu0 %462 }
 0x179   : > { %521 = vst.msk [vmem:[%s280_s22 + $0x28] sm:$0xff] %vm476_vm1, %v511_v48  ;;  %478 = vst.msk [vmem:[%s274_s18 + $0x8] sm:$0xff] %vm476_vm1, %v463_v49 }
 0x17c   : > { %v515_v50 = vpop.xlane.xlu1 %514  ;;  %v513_v51 = vpop.xlane.xlu0 %512 }
 0x17d   : > { %523 = vst.msk [vmem:[%s280_s22 + $0x38] sm:$0xff] %vm476_vm1, %v515_v50  ;;  %522 = vst.msk [vmem:[%s280_s22 + $0x30] sm:$0xff] %vm476_vm1, %v513_v51 }
 0x17e PF: > { %s17_s21 = sadd.s32 1, %s756_s21  }
 0x17f   : > { %p14_p4 = scmp.ge.s32.totalorder %s17_s21, 6  }
 0x181   :  { %16 = sbr.rel (!%p14_p4) target bundleno = 1 (0x1), region = 90 }

// kernel: gat_forward.7
= control target key start
LH: loop header
LB: loop body
LE: loop exit
PB: predicated region body
PF: predicated region fallthrough
CT: control target
= control target key end

     0   :  { %s1157_s18 = smov 0   ;;  %s1509_s0 = inlined_call_operand.vmem [shape: s8[256,256], index: 0, kind: input, shape index: {}]   ;;  %s1510_s1 = inlined_call_operand.vmem [shape: f32[256,1], index: 1, kind: input, shape index: {}]   ;;  %s1511_s2 = inlined_call_operand.vmem [shape: f32[1,256], index: 2, kind: input, shape index: {}]   ;;  %s1512_s3 = inlined_call_operand.vmem [shape: bf16[256,128], index: 3, kind: input, shape index: {}]   ;;  %s1513_s4 = inlined_call_operand.vmem [shape: f32[1,128], index: 4, kind: input, shape index: {}]   ;;  %s1514_s5 = inlined_call_operand.vmem [shape: bf16[256,128], index: 5, kind: output, shape index: {}]  }
   0x1 LB: > { %s916_s19 = sadd.s32 4294967295, %s1124_s18   ;;  %p920_p0 = scmp.ge.s32.totalorder %s1124_s18, 1  ;;  %s1124_s18 = sphi %s1157_s18, %s15_s18  }
   0x2   : > { %p200_p1 = scmp.lt.s32.totalorder %s1124_s18, 5 }
   0x4   : > { %p201_p2 = pnand %p920_p0, %p200_p1 }
   0x5   : > { %s924_s20 = sshll.u32 (!%p201_p2), %s916_s19, 3  ;;  %s921_s25 = sshll.u32 (!%p201_p2), %s916_s19, 1 }
   0x6   : > { %204 = sbr.rel (%p201_p2) target bundleno = 693 (0x2b5), region = 40  ;;  %p242_p3 = scmp.lt.s32.totalorder (!%p201_p2), %s924_s20, 31 }
   0x7   : > { %p235_p4 = scmp.lt.s32.totalorder (!%p201_p2), %s921_s25, 7 }
   0xb   : > { %v1126_v0 = vmov 0   ;;  %s1546_s20 = smov (!%p242_p3, %s924_s20), 31  ;;  %s1548_s25 = smov (!%p235_p4, %s921_s25), 7  ;;  %v306_v26 = vlaneseq  ;;  %v264_v50 = vld [vmem:[%s1511_s2] sm:$0x3] }
   0xc   : > { %1053 = vset.pattern.permute.xlu1 %v1126_v0  ;;  %1052 = vset.pattern.permute.xlu0 %v1126_v0  ;;  %s925_s21 = sshll.u32 %s1546_s20, 3  ;;  %s955_s26 = sshll.u32 %s1548_s25, 4 }
   0xd   : > { %s245_s24 = scalar_lea.vmem %s1510_s1, %s925_s21  ;;  %s239_s29 = scalar_lea.vmem %s1509_s0, %s955_s26  ;;  %v307_v38 = vshrl.u32 %v306_v26, 7 }
   0xe   : > { %v260_v1 = vld [vmem:[%s245_s24 + $0x20] sm:$0xff]  ;;  %v261_v3 = vld [vmem:[%s245_s24 + $0x28] sm:$0xff]  ;;  %v259_v5 = vld [vmem:[%s245_s24 + $0x18] sm:$0xff]  ;;  %s927_s19 = sshll.u32 %s1546_s20, 2 }
   0xf   : > { %v256_v2 = vld [vmem:[%s245_s24] sm:$0xff]  ;;  %287 = vperm.xlu1 %1053, %v260_v1   ;;  %v257_v4 = vld [vmem:[%s245_s24 + $0x8] sm:$0xff]  ;;  %v258_v6 = vld [vmem:[%s245_s24 + $0x10] sm:$0xff]  ;;  %v308_v47 = vsub.s32 0, %v307_v38  ;;  %v312_v48 = vsub.s32 1, %v307_v38  ;;  %s1500_s23 = scalar_lea.vmem %s1514_s5, %s927_s19 }
  0x10   : > { %267 = vperm.xlu0 %1052, %v256_v2   ;;  %v263_v7 = vld [vmem:[%s245_s24 + $0x38] sm:$0xff]  ;;  %v262_v8 = vld [vmem:[%s245_s24 + $0x30] sm:$0xff]  ;;  %v364_v9 = vld [vmem:[%s239_s29] sm:$0xff] }
  0x11   : > { %v365_v10 = vld [vmem:[%s239_s29 + $0x8] sm:$0xff]  ;;  %vm368_vm0 = vnez %v364_v9  ;;  %v366_v11 = vld [vmem:[%s239_s29 + $0x10] sm:$0xff]  ;;  %v367_v12 = vld [vmem:[%s239_s29 + $0x18] sm:$0xff]  ;;  %v1186_v57 = vrot.slane %v264_v50, %v308_v47  ;;  %v1188_v58 = vrot.slane %v264_v50, %v312_v48 }
  0x12   : > { %vm369_vm1 = vnez %v365_v10  ;;  %v372_v13 = vsel %vm368_vm0, 16843009, %v1126_v0  ;;  %vm370_vm2 = vnez %v366_v11  ;;  %vm371_vm3 = vnez %v367_v12 }
  0x13   : > { %292 = vperm.xlu1 %1053, %v261_v3   ;;  %v373_v14 = vsel %vm369_vm1, 16843009, %v1126_v0  ;;  %v376_v15 = vunpack.c.0.s8 %v372_v13  ;;  %v374_v17 = vsel %vm370_vm2, 16843009, %v1126_v0  ;;  %v375_v18 = vsel %vm371_vm3, 16843009, %v1126_v0 }
  0x14   : > { %272 = vperm.xlu0 %1052, %v257_v4   ;;  %v377_v16 = vunpack.c.0.s8 %v373_v14  ;;  %v378_v19 = vunpack.c.1.s8 %v372_v13  ;;  %v379_v20 = vunpack.c.1.s8 %v373_v14  ;;  %v384_v22 = vunpack.c.0.s8 %v374_v17 }
  0x15   : > { %v385_v23 = vunpack.c.0.s8 %v375_v18  ;;  %v380_v24 = vunpack.c.2.s8 %v372_v13  ;;  %v381_v25 = vunpack.c.2.s8 %v373_v14  ;;  %v386_v30 = vunpack.c.1.s8 %v374_v17 }
  0x16   : > { %v392_v21 = vpack.c.b16 %v377_v16, %v376_v15  ;;  %v394_v27 = vpack.c.b16 %v379_v20, %v378_v19  ;;  %v387_v31 = vunpack.c.1.s8 %v375_v18  ;;  %v388_v33 = vunpack.c.2.s8 %v374_v17 }
  0x17   : > { %282 = vperm.xlu1 %1053, %v259_v5   ;;  %v400_v29 = vpack.c.b16 %v385_v23, %v384_v22  ;;  %v396_v32 = vpack.c.b16 %v381_v25, %v380_v24  ;;  %v389_v34 = vunpack.c.2.s8 %v375_v18  ;;  %v382_v35 = vunpack.c.3.s8 %v372_v13 }
  0x18   : > { %277 = vperm.xlu0 %1052, %v258_v6   ;;  %v393_v28 = vpack.c.b8 %v392_v21, %v392_v21  ;;  %v383_v36 = vunpack.c.3.s8 %v373_v14  ;;  %v395_v37 = vpack.c.b8 %v394_v27, %v394_v27  ;;  %v402_v40 = vpack.c.b16 %v387_v31, %v386_v30 }
  0x19   : > { %v401_v39 = vpack.c.b8 %v400_v29, %v400_v29  ;;  %v397_v41 = vpack.c.b8 %v396_v32, %v396_v32  ;;  %v404_v42 = vpack.c.b16 %v389_v34, %v388_v33  ;;  %v390_v45 = vunpack.c.3.s8 %v374_v17 }
  0x1a   : > { %vm408_vm4 = vnez %v393_v28  ;;  %v398_v43 = vpack.c.b16 %v383_v36, %v382_v35  ;;  %vm409_vm5 = vnez %v395_v37  ;;  %v391_v46 = vunpack.c.3.s8 %v375_v18 }
  0x1b   : > { %302 = vperm.xlu1 %1053, %v263_v7   ;;  %v416_v44 = vsel %vm408_vm4, 16843009, %v1126_v0  ;;  %vm412_vm6 = vnez %v401_v39  ;;  %v403_v49 = vpack.c.b8 %v402_v40, %v402_v40  ;;  %vm410_vm7 = vnez %v397_v41 }
  0x1c   : > { %297 = vperm.xlu0 %1052, %v262_v8   ;;  %v424_v51 = vunpack.c.0.s8 %v416_v44  ;;  %v417_v52 = vsel %vm409_vm5, 16843009, %v1126_v0  ;;  %v405_v53 = vpack.c.b8 %v404_v42, %v404_v42  ;;  %v420_v54 = vsel %vm412_vm6, 16843009, %v1126_v0 }
  0x1d   : > { %v399_v55 = vpack.c.b8 %v398_v43, %v398_v43  ;;  %v406_v56 = vpack.c.b16 %v391_v46, %v390_v45  ;;  %v418_v59 = vsel %vm410_vm7, 16843009, %v1126_v0  ;;  %vm413_vm8 = vnez %v403_v49  ;;  %v1055_v49 = vld [vmem:[%s1512_s3 + $0x38] sm:$0xff]  }
  0x1e   : > { %v425_v60 = vunpack.c.1.s8 %v416_v44  ;;  %v426_v61 = vunpack.c.0.s8 %v417_v52  ;;  %v427_v62 = vunpack.c.1.s8 %v417_v52  ;;  %vm1191_vm9 = vcmp.ne.s32.totalorder %v424_v51, 0 }
  0x1f   : > { %v432_v1 = vunpack.c.0.s8 %v420_v54  ;;  %v433_v2 = vunpack.c.1.s8 %v420_v54  ;;  %vm414_vm10 = vnez %v405_v53  ;;  %v428_v5 = vunpack.c.0.s8 %v418_v59 }
  0x20   : > { %v421_v6 = vsel %vm413_vm8, 16843009, %v1126_v0  ;;  %vm1196_vm11 = vnez %v399_v55  ;;  %v407_v8 = vpack.c.b8 %v406_v56, %v406_v56  ;;  %vm1206_vm12 = vcmp.ne.s32.totalorder %v425_v60, 0 }
  0x21   : > { %vm1210_vm13 = vcmp.ne.s32.totalorder %v426_v61, 0  ;;  %v429_v15 = vunpack.c.1.s8 %v418_v59  ;;  %v422_v16 = vsel %vm414_vm10, 16843009, %v1126_v0  ;;  %vm1215_vm14 = vcmp.ne.s32.totalorder %v432_v1, 0 }
  0x22   : > { %v434_v20 = vunpack.c.0.s8 %v421_v6  ;;  %vm1219_vm15 = vcmp.ne.s32.totalorder %v427_v62, 0  ;;  %vm1223_vm0 = vcmp.ne.s32.totalorder %v433_v2, 0  ;;  %vm1227_vm1 = vcmp.ne.s32.totalorder %v428_v5, 0 }
  0x23   : > { %v435_v27 = vunpack.c.1.s8 %v421_v6  ;;  %v419_v28 = vsel %vm1196_vm11, 16843009, %v1126_v0  ;;  %vm415_vm2 = vnez %v407_v8  ;;  %v436_v31 = vunpack.c.0.s8 %v422_v16 }
  0x24   : > { %v437_v32 = vunpack.c.1.s8 %v422_v16  ;;  %vm1243_vm3 = vcmp.ne.s32.totalorder %v429_v15, 0  ;;  %vm1247_vm4 = vcmp.ne.s32.totalorder %v434_v20, 0  ;;  %v430_v40 = vunpack.c.0.s8 %v419_v28 }
  0x25   : > { %v431_v41 = vunpack.c.1.s8 %v419_v28  ;;  %v1252_v42 = vsel %vm415_vm2, 16843009, %v1126_v0  ;;  %vm1255_vm5 = vcmp.ne.s32.totalorder %v435_v27, 0  ;;  %vm1263_vm6 = vcmp.ne.s32.totalorder %v436_v31, 0 }
  0x26   : > { %vm1273_vm7 = vcmp.ne.s32.totalorder %v437_v32, 0  ;;  %vm1281_vm8 = vcmp.ne.s32.totalorder %v430_v40, 0 }
  0x27   : > { %vm1285_vm10 = vcmp.ne.s32.totalorder %v431_v41, 0 }
  0x8a   : > { %v288_v3 = vpop.permute.xlu1 %287 }
  0x8b   : > { %v268_v4 = vpop.permute.xlu0 %267  ;;  %v324_v9 = vadd.f32 %v1186_v57, %v288_v3  ;;  %v1202_v10 = vadd.f32 %v1188_v58, %v288_v3 }
  0x8c   : > { %v316_v11 = vadd.f32 %v1186_v57, %v268_v4  ;;  %v317_v12 = vadd.f32 %v1188_v58, %v268_v4 }
  0x8d   : > { %v340_v17 = vmul.f32 0.2, %v324_v9  ;;  %v341_v29 = vmul.f32 0.2, %v1202_v10 }
  0x8e   : > { %v332_v18 = vmul.f32 0.2, %v316_v11  ;;  %v333_v21 = vmul.f32 0.2, %v317_v12  ;;  %v293_v22 = vpop.permute.xlu1 %292 }
  0x8f   : > { %v273_v23 = vpop.permute.xlu0 %272  ;;  %v1236_v30 = vadd.f32 %v1186_v57, %v293_v22  ;;  %v1239_v34 = vadd.f32 %v1188_v58, %v293_v22  ;;  %v356_v38 = vmax.f32 %v324_v9, %v340_v17  ;;  %v357_v54 = vmax.f32 %v1202_v10, %v341_v29 }
  0x90   : > { %v348_v33 = vmax.f32 %v316_v11, %v332_v18  ;;  %v318_v35 = vadd.f32 %v1186_v57, %v273_v23  ;;  %v319_v36 = vadd.f32 %v1188_v58, %v273_v23  ;;  %v349_v43 = vmax.f32 %v317_v12, %v333_v21 }
  0x91   : > { %v342_v44 = vmul.f32 0.2, %v1236_v30  ;;  %v343_v50 = vmul.f32 0.2, %v1239_v34  ;;  %v1279_v2 = vsel %vm1215_vm14, %v356_v38, -1e+30 }
  0x92   : > { %v334_v45 = vmul.f32 0.2, %v318_v35  ;;  %v335_v46 = vmul.f32 0.2, %v319_v36  ;;  %v283_v47 = vpop.permute.xlu1 %282  ;;  %v1271_v59 = vsel %vm1191_vm9, %v348_v33, -1e+30 }
  0x93   : > { %v278_v48 = vpop.permute.xlu0 %277  ;;  %v322_v51 = vadd.f32 %v1186_v57, %v283_v47  ;;  %v323_v52 = vadd.f32 %v1188_v58, %v283_v47  ;;  %v358_v63 = vmax.f32 %v1236_v30, %v342_v44  ;;  %v1292_v7 = vsel %vm1206_vm12, %v349_v43, -1e+30 }
  0x94   : > { %v320_v0 = vadd.f32 %v1186_v57, %v278_v48  ;;  %v350_v55 = vmax.f32 %v318_v35, %v334_v45  ;;  %v321_v56 = vadd.f32 %v1188_v58, %v278_v48  ;;  %v351_v61 = vmax.f32 %v319_v36, %v335_v46  ;;  %v1054_v48 = vld [vmem:[%s1512_s3 + $0x78] sm:$0xff]  }
  0x95   : > { %v338_v62 = vmul.f32 0.2, %v322_v51  ;;  %v339_v5 = vmul.f32 0.2, %v323_v52  ;;  %v359_v10 = vmax.f32 %v1239_v34, %v343_v50  ;;  %v472_v12 = vmax.f32 %v1271_v59, %v1292_v7  ;;  %v1056_v50 = vld [vmem:[%s1512_s3 + $0x70] sm:$0xff]   ;;  %987 = vmatprep.subr.bf16.mxu0 %v1054_v48  ;;  %1027 = vmatprep.subr.bf16.mxu1 %v1054_v48 }
  0x96   : > { %v336_v1 = vmul.f32 0.2, %v320_v0  ;;  %v337_v6 = vmul.f32 0.2, %v321_v56  ;;  %v303_v8 = vpop.permute.xlu1 %302  ;;  %v1299_v15 = vsel %vm1210_vm13, %v350_v55, -1e+30  ;;  %v438_v34 = vunpack.c.0.s8 %v1252_v42  ;;  %988 = vmatpush3.bf16.msra.mxu0 %v1055_v49  ;;  %1035 = vmatpush3.bf16.msra.mxu1 %v1055_v49 }
  0x97   : > { %v298_v9 = vpop.permute.xlu0 %297  ;;  %v330_v17 = vadd.f32 %v1186_v57, %v303_v8  ;;  %v331_v18 = vadd.f32 %v1188_v58, %v303_v8  ;;  %473 = vmax.xlane.f32.xlu0 %v472_v12  ;;  %v1307_v20 = vsel %vm1219_vm15, %v351_v61, -1e+30  ;;  %v1311_v21 = vsel %vm1223_vm0, %v357_v54, -1e+30  ;;  %989 = vmatprep.subr.bf16.mxu0 %v1056_v50  ;;  %v1059_v49 = vld [vmem:[%s1512_s3 + $0x28] sm:$0xff]  }
  0x98   : > { %v352_v11 = vmax.f32 %v320_v0, %v336_v1  ;;  %v353_v16 = vmax.f32 %v321_v56, %v337_v6  ;;  %v328_v13 = vadd.f32 %v1186_v57, %v298_v9  ;;  %v329_v19 = vadd.f32 %v1188_v58, %v298_v9  ;;  %1028 = vmatprep.subr.bf16.mxu1 %v1056_v50  ;;  %v1060_v50 = vld [vmem:[%s1512_s3 + $0x60] sm:$0xff]  }
  0x99   : > { %v354_v22 = vmax.f32 %v322_v51, %v338_v62  ;;  %v355_v23 = vmax.f32 %v323_v52, %v339_v5  ;;  %v475_v57 = vmax.f32 %v1299_v15, %v1307_v20  ;;  %v346_v28 = vmul.f32 0.2, %v330_v17  ;;  %v1057_v51 = vld [vmem:[%s1512_s3 + $0x30] sm:$0xff]   ;;  %v1058_v52 = vld [vmem:[%s1512_s3 + $0x68] sm:$0xff]  }
  0x9a   : > { %v1315_v14 = vsel %vm1227_vm1, %v352_v11, -1e+30  ;;  %v344_v27 = vmul.f32 0.2, %v328_v13  ;;  %v345_v58 = vmul.f32 0.2, %v329_v19  ;;  %v484_v24 = vmax.f32 %v1279_v2, %v1311_v21  ;;  %990 = vmatpush3.bf16.msra.mxu0 %v1057_v51  ;;  %1036 = vmatpush3.bf16.msra.mxu1 %v1057_v51 }
  0x9b   : > { %v1323_v25 = vsel %vm1243_vm3, %v353_v16, -1e+30  ;;  %v347_v29 = vmul.f32 0.2, %v331_v18  ;;  %476 = vmax.xlane.f32.xlu1 %v475_v57  ;;  %v1329_v31 = vsel %vm1247_vm4, %v358_v63, -1e+30  ;;  %v439_v35 = vunpack.c.1.s8 %v1252_v42  ;;  %991 = vmatprep.subr.bf16.mxu0 %v1058_v52 }
  0x9c   : > { %v360_v30 = vmax.f32 %v328_v13, %v344_v27  ;;  %v478_v26 = vmax.f32 %v1315_v14, %v1323_v25  ;;  %v361_v32 = vmax.f32 %v329_v19, %v345_v58  ;;  %485 = vmax.xlane.f32.xlu0 %v484_v24  ;;  %v1333_v33 = vsel %vm1255_vm5, %v359_v10, -1e+30  ;;  %1029 = vmatprep.subr.bf16.mxu1 %v1058_v52 }
  0x9d   : > { %v362_v37 = vmax.f32 %v330_v17, %v346_v28  ;;  %v487_v38 = vmax.f32 %v1329_v31, %v1333_v33  ;;  %v363_v40 = vmax.f32 %v331_v18, %v347_v29  ;;  %v1351_v42 = vsel %vm1281_vm8, %v354_v22, -1e+30 }
  0x9e   : > { %v1339_v36 = vsel %vm1263_vm6, %v360_v30, -1e+30  ;;  %v1345_v39 = vsel %vm1273_vm7, %v361_v32, -1e+30  ;;  %v1355_v43 = vsel %vm1285_vm10, %v355_v23, -1e+30  ;;  %992 = vmatpush3.bf16.msra.mxu0 %v1059_v49  ;;  %1037 = vmatpush3.bf16.msra.mxu1 %v1059_v49 }
  0x9f   : > { %479 = vmax.xlane.f32.xlu1 %v478_v26  ;;  %v490_v41 = vmax.f32 %v1339_v36, %v1345_v39  ;;  %vm454_vm9 = vcmp.ne.s32.totalorder %v438_v34, 0  ;;  %vm455_vm11 = vcmp.ne.s32.totalorder %v439_v35, 0  ;;  %v481_v44 = vmax.f32 %v1351_v42, %v1355_v43  ;;  %993 = vmatprep.subr.bf16.mxu0 %v1060_v50 }
  0xa0   : > { %488 = vmax.xlane.f32.xlu0 %v487_v38  ;;  %v1359_v45 = vsel %vm454_vm9, %v362_v37, -1e+30  ;;  %v1361_v46 = vsel %vm455_vm11, %v363_v40, -1e+30  ;;  %1030 = vmatprep.subr.bf16.mxu1 %v1060_v50 }
  0xa1   : > { %v493_v47 = vmax.f32 %v1359_v45, %v1361_v46 }
  0xa3   : > { %491 = vmax.xlane.f32.xlu1 %v490_v41 }
  0xa4   : > { %482 = vmax.xlane.f32.xlu0 %v481_v44 }
  0xa8   : > { %494 = vmax.xlane.f32.xlu0 %v493_v47 }
 0x120   : > { %v474_v0 = vpop.xlane.xlu0 %473 }
 0x121   : > { %v496_v53 = vsub.f32 %v1271_v59, %v474_v0  ;;  %v497_v54 = vsub.f32 %v1292_v7, %v474_v0 }
 0x123   : > { %v512_v55 = vmul.f32 1.442695, %v496_v53  ;;  %v514_v56 = vmul.f32 1.442695, %v497_v54  ;;  %v1061_v54 = vld [vmem:[%s1512_s3 + $0x20] sm:$0xff]  }
 0x124   : > { %v477_v60 = vpop.xlane.xlu1 %476  ;;  %994 = vmatpush3.bf16.msra.mxu0 %v1061_v54  ;;  %1038 = vmatpush3.bf16.msra.mxu1 %v1061_v54 }
 0x125   : > { %v498_v61 = vsub.f32 %v1299_v15, %v477_v60  ;;  %v499_v62 = vsub.f32 %v1307_v20, %v477_v60  ;;  %v486_v1 = vpop.xlane.xlu0 %485  ;;  %1070 = vpow2.f32 %v512_v55  ;;  %v1062_v55 = vld [vmem:[%s1512_s3 + $0x58] sm:$0xff]   ;;  %v1064_v60 = vld [vmem:[%s1512_s3 + $0x50] sm:$0xff]  }
 0x126   : > { %v504_v3 = vsub.f32 %v1279_v2, %v486_v1  ;;  %v505_v4 = vsub.f32 %v1311_v21, %v486_v1  ;;  %1072 = vpow2.f32 %v514_v56  ;;  %995 = vmatprep.subr.bf16.mxu0 %v1062_v55  ;;  %v1063_v56 = vld [vmem:[%s1512_s3 + $0x18] sm:$0xff]   ;;  %1031 = vmatprep.subr.bf16.mxu1 %v1062_v55  ;;  %v1067_v1 = vld [vmem:[%s1512_s3 + $0x8] sm:$0xff]  }
 0x127   : > { %v516_v63 = vmul.f32 1.442695, %v498_v61  ;;  %v518_v5 = vmul.f32 1.442695, %v499_v62  ;;  %v1065_v61 = vld [vmem:[%s1512_s3 + $0x10] sm:$0xff]   ;;  %v1066_v62 = vld [vmem:[%s1512_s3 + $0x48] sm:$0xff]  }
 0x128   : > { %v528_v6 = vmul.f32 1.442695, %v504_v3  ;;  %v530_v59 = vmul.f32 1.442695, %v505_v4  ;;  %v480_v8 = vpop.xlane.xlu1 %479  ;;  %996 = vmatpush3.bf16.msra.mxu0 %v1063_v56  ;;  %1039 = vmatpush3.bf16.msra.mxu1 %v1063_v56  ;;  %v1068_v3 = vld [vmem:[%s1512_s3 + $0x40] sm:$0xff]  }
 0x129   : > { %1074 = vpow2.f32 %v516_v63  ;;  %v500_v7 = vsub.f32 %v1315_v14, %v480_v8  ;;  %v501_v9 = vsub.f32 %v1323_v25, %v480_v8  ;;  %v489_v10 = vpop.xlane.xlu0 %488  ;;  %997 = vmatprep.subr.bf16.mxu0 %v1064_v60  ;;  %1032 = vmatprep.subr.bf16.mxu1 %v1064_v60  ;;  %v1069_v4 = vld [vmem:[%s1512_s3] sm:$0xff]  }
 0x12a   : > { %1076 = vpow2.f32 %v518_v5  ;;  %v506_v11 = vsub.f32 %v1329_v31, %v489_v10  ;;  %v507_v12 = vsub.f32 %v1333_v33, %v489_v10 }
 0x12b   : > { %1078 = vpow2.f32 %v528_v6  ;;  %v520_v2 = vmul.f32 1.442695, %v500_v7  ;;  %v522_v15 = vmul.f32 1.442695, %v501_v9 }
 0x12c   : > { %1080 = vpow2.f32 %v530_v59  ;;  %v532_v16 = vmul.f32 1.442695, %v506_v11  ;;  %v534_v17 = vmul.f32 1.442695, %v507_v12  ;;  %v492_v18 = vpop.xlane.xlu1 %491  ;;  %998 = vmatpush3.bf16.msra.mxu0 %v1065_v61  ;;  %1040 = vmatpush3.bf16.msra.mxu1 %v1065_v61 }
 0x12d   : > { %1082 = vpow2.f32 %v520_v2  ;;  %v508_v13 = vsub.f32 %v1339_v36, %v492_v18  ;;  %v509_v19 = vsub.f32 %v1345_v39, %v492_v18  ;;  %v483_v20 = vpop.xlane.xlu0 %482  ;;  %999 = vmatprep.subr.bf16.mxu0 %v1066_v62  ;;  %1033 = vmatprep.subr.bf16.mxu1 %v1066_v62 }
 0x12e   : > { %1084 = vpow2.f32 %v522_v15  ;;  %v502_v21 = vsub.f32 %v1351_v42, %v483_v20  ;;  %v503_v14 = vsub.f32 %v1355_v43, %v483_v20 }
 0x12f   : > { %1086 = vpow2.f32 %v532_v16  ;;  %v536_v22 = vmul.f32 1.442695, %v508_v13  ;;  %v538_v23 = vmul.f32 1.442695, %v509_v19 }
 0x130   : > { %1088 = vpow2.f32 %v534_v17  ;;  %v524_v27 = vmul.f32 1.442695, %v502_v21  ;;  %v526_v57 = vmul.f32 1.442695, %v503_v14  ;;  %1000 = vmatpush3.bf16.msra.mxu0 %v1067_v1  ;;  %1041 = vmatpush3.bf16.msra.mxu1 %v1067_v1 }
 0x131   : > { %1090 = vpow2.f32 %v536_v22  ;;  %v495_v28 = vpop.xlane.xlu0 %494  ;;  %1001 = vmatprep.subr.bf16.mxu0 %v1068_v3  ;;  %1034 = vmatprep.subr.bf16.mxu1 %v1068_v3 }
 0x132   : > { %1092 = vpow2.f32 %v538_v23  ;;  %v510_v58 = vsub.f32 %v1359_v45, %v495_v28  ;;  %v511_v24 = vsub.f32 %v1361_v46, %v495_v28  ;;  %v1396_v25 = vpop.eup %1070 }
 0x133   : > { %1094 = vpow2.f32 %v524_v27  ;;  %v1398_v29 = vpop.eup %1072 }
 0x134   : > { %1096 = vpow2.f32 %v526_v57  ;;  %v540_v30 = vmul.f32 1.442695, %v510_v58  ;;  %v542_v26 = vmul.f32 1.442695, %v511_v24  ;;  %v544_v31 = vadd.f32 %v1398_v29, %v1396_v25  ;;  %1002 = vmatpush3.bf16.msra.mxu0 %v1069_v4  ;;  %1042 = vmatpush3.bf16.msra.mxu1 %v1069_v4 }
 0x136   : > { %v1402_v32 = vpop.eup %1074  ;;  %1098 = vpow2.f32 %v540_v30  ;;  %545 = vadd.xlane.f32.xlu1 %v544_v31 }
 0x137   : > { %v1404_v33 = vpop.eup %1076  ;;  %1100 = vpow2.f32 %v542_v26 }
 0x138   : > { %v1406_v34 = vpop.eup %1078  ;;  %v547_v35 = vadd.f32 %v1404_v33, %v1402_v32 }
 0x139   : > { %v1410_v36 = vpop.eup %1080 }
 0x13a   : > { %v1412_v37 = vpop.eup %1082  ;;  %548 = vadd.xlane.f32.xlu0 %v547_v35  ;;  %v556_v38 = vadd.f32 %v1410_v36, %v1406_v34 }
 0x13b   : > { %v1416_v39 = vpop.eup %1084 }
 0x13c   : > { %v1418_v40 = vpop.eup %1086  ;;  %557 = vadd.xlane.f32.xlu1 %v556_v38  ;;  %v550_v41 = vadd.f32 %v1416_v39, %v1412_v37 }
 0x13d   : > { %v1422_v42 = vpop.eup %1088 }
 0x13e   : > { %v1424_v43 = vpop.eup %1090  ;;  %v559_v44 = vadd.f32 %v1422_v42, %v1418_v40 }
 0x13f   : > { %v1428_v45 = vpop.eup %1092 }
 0x140   : > { %v1430_v46 = vpop.eup %1094  ;;  %551 = vadd.xlane.f32.xlu1 %v550_v41  ;;  %560 = vadd.xlane.f32.xlu0 %v559_v44  ;;  %v562_v47 = vadd.f32 %v1428_v45, %v1424_v43  ;;  %v928_v44 = vld [vmem:[%s1513_s4] ss:$0 sm:$0xff] }
 0x141   : > { %v1434_v48 = vpop.eup %1096 }
 0x142   : > { %v553_v51 = vadd.f32 %v1434_v48, %v1430_v46 }
 0x143   : > { %v1444_v52 = vpop.eup %1098 }
 0x144   : > { %v1446_v0 = vpop.eup %1100  ;;  %563 = vadd.xlane.f32.xlu1 %v562_v47  ;;  %554 = vadd.xlane.f32.xlu0 %v553_v51 }
 0x145   : > { %v565_v53 = vadd.f32 %v1446_v0, %v1444_v52 }
 0x148   : > { %566 = vadd.xlane.f32.xlu0 %v565_v53 }
 0x1bf   : > { %v546_v63 = vpop.xlane.xlu1 %545 }
 0x1c0   : > { %1102 = vrcp.f32 %v546_v63 }
 0x1c3   : > { %v549_v5 = vpop.xlane.xlu0 %548 }
 0x1c4   : > { %1104 = vrcp.f32 %v549_v5 }
 0x1c5   : > { %v558_v6 = vpop.xlane.xlu1 %557 }
 0x1c6   : > { %1106 = vrcp.f32 %v558_v6 }
 0x1c9   : > { %v552_v59 = vpop.xlane.xlu1 %551  ;;  %v561_v8 = vpop.xlane.xlu0 %560 }
 0x1ca   : > { %1108 = vrcp.f32 %v561_v8 }
 0x1cb   : > { %1110 = vrcp.f32 %v552_v59 }
 0x1cd   : > { %v564_v7 = vpop.xlane.xlu1 %563  ;;  %v555_v9 = vpop.xlane.xlu0 %554 }
 0x1ce   : > { %v1103_v10 = vpop.eup %1102  ;;  %1112 = vrcp.f32 %v555_v9 }
 0x1cf   : > { %1114 = vrcp.f32 %v564_v7  ;;  %v577_v2 = vmul.f32 %v1103_v10, %v1398_v29  ;;  %v576_v16 = vmul.f32 %v1103_v10, %v1396_v25 }
 0x1d1   : > { %v1105_v11 = vpop.eup %1104  ;;  %v567_v12 = vpop.xlane.xlu0 %566 }
 0x1d2   : > { %1116 = vrcp.f32 %v567_v12  ;;  %v579_v15 = vmul.f32 %v1105_v11, %v1404_v33  ;;  %v578_v17 = vmul.f32 %v1105_v11, %v1402_v32 }
 0x1d3   : > { %v1107_v19 = vpop.eup %1106 }
 0x1d4   : > { %v593_v18 = vpack.c.bf16 %v579_v15, %v577_v2  ;;  %v592_v13 = vpack.c.bf16 %v578_v17, %v576_v16  ;;  %v585_v21 = vmul.f32 %v1107_v19, %v1410_v36  ;;  %v584_v22 = vmul.f32 %v1107_v19, %v1406_v34 }
 0x1d6   : > { %767 = vmatprep.mubr.bf16.mxu0 %v593_v18 }
 0x1d7   : > { %768 = vmatmul.mubr.bf16.vlgmr.msra.gmra.mxu0 %v592_v13  ;;  %v1109_v20 = vpop.eup %1108 }
 0x1d8   : > { %v587_v14 = vmul.f32 %v1109_v20, %v1422_v42  ;;  %v586_v23 = vmul.f32 %v1109_v20, %v1418_v40  ;;  %v1111_v27 = vpop.eup %1110 }
 0x1d9   : > { %v581_v25 = vmul.f32 %v1111_v27, %v1416_v39  ;;  %v580_v30 = vmul.f32 %v1111_v27, %v1412_v37 }
 0x1da   : > { %v597_v57 = vpack.c.bf16 %v587_v14, %v585_v21  ;;  %v596_v28 = vpack.c.bf16 %v586_v23, %v584_v22 }
 0x1db   : > { %v1113_v58 = vpop.eup %1112 }
 0x1dc   : > { %v1115_v24 = vpop.eup %1114  ;;  %783 = vmatprep.mubr.bf16.mxu1 %v597_v57  ;;  %v583_v29 = vmul.f32 %v1113_v58, %v1434_v48  ;;  %v582_v26 = vmul.f32 %v1113_v58, %v1430_v46 }
 0x1dd   : > { %784 = vmatmul.mubr.bf16.vlgmr.msra.gmra.mxu1 %v596_v28  ;;  %v589_v34 = vmul.f32 %v1115_v24, %v1428_v45  ;;  %v588_v36 = vmul.f32 %v1115_v24, %v1424_v43 }
 0x1de   : > { %v595_v32 = vpack.c.bf16 %v583_v29, %v581_v25  ;;  %v594_v33 = vpack.c.bf16 %v582_v26, %v580_v30 }
 0x1df   : > { %v1117_v31 = vpop.eup %1116 }
 0x1e0   : > { %v591_v35 = vmul.f32 %v1117_v31, %v1446_v0  ;;  %v590_v38 = vmul.f32 %v1117_v31, %v1444_v52  ;;  %775 = vmatprep.mubr.bf16.mxu0 %v595_v32 }
 0x1e1   : > { %776 = vmatmul.mubr.bf16.gmra.mxu0 %v594_v33 }
 0x1e2   : > { %v599_v39 = vpack.c.bf16 %v591_v35, %v589_v34  ;;  %v598_v40 = vpack.c.bf16 %v590_v38, %v588_v36 }
 0x1e4   : > { %791 = vmatprep.mubr.bf16.mxu1 %v599_v39 }
 0x1e5   : > { %792 = vmatmul.mubr.bf16.gmra.mxu1 %v598_v40 }
 0x297   : > { %v1003_v37 = vpop.f32.mrf.mxu0 }
 0x299   : > { %v1004_v41 = vpop.f32.mrf.mxu0 }
 0x29a   : > { %v1005_v42 = vadd.f32 %v1004_v41, %v1003_v37 }
 0x29b   : > { %v1006_v45 = vpop.f32.mrf.mxu0 }
 0x29c   : > { %v770_v47 = vadd.f32 %v1005_v42, %v928_v44 }
 0x29d   : > { %v1007_v46 = vpop.f32.mrf.mxu0  ;;  %v1015_v43 = vpop.f32.mrf.mxu1 }
 0x29e   : > { %v1008_v48 = vadd.f32 %v1007_v46, %v1006_v45  ;;  %v800_v52 = vmax.f32 %v770_v47, 0.0 }
 0x29f   : > { %v1016_v50 = vpop.f32.mrf.mxu1 }
 0x2a0   : > { %v773_v49 = vadd.f32 %v1008_v48, %v928_v44  ;;  %v1017_v51 = vadd.f32 %v1016_v50, %v1015_v43 }
 0x2a1   : > { %v1009_v53 = vpop.f32.mrf.mxu0  ;;  %v1018_v54 = vpop.f32.mrf.mxu1 }
 0x2a2   : > { %v801_v0 = vmax.f32 %v773_v49, 0.0  ;;  %v786_v56 = vadd.f32 %v1017_v51, %v928_v44 }
 0x2a3   : > { %v1010_v60 = vpop.f32.mrf.mxu0  ;;  %v1019_v61 = vpop.f32.mrf.mxu1 }
 0x2a4   : > { %v967_v55 = vpack.c.bf16 %v801_v0, %v800_v52  ;;  %v1011_v62 = vadd.f32 %v1010_v60, %v1009_v53  ;;  %v1020_v1 = vadd.f32 %v1019_v61, %v1018_v54  ;;  %v804_v5 = vmax.f32 %v786_v56, 0.0 }
 0x2a5   : > { %v1012_v3 = vpop.f32.mrf.mxu0  ;;  %v1021_v4 = vpop.f32.mrf.mxu1 }
 0x2a6   : > { %968 = vst [vmem:[%s1500_s23] sm:$0xff] %v967_v55   ;;  %v789_v63 = vadd.f32 %v1020_v1, %v928_v44  ;;  %v778_v8 = vadd.f32 %v1011_v62, %v928_v44 }
 0x2a7   : > { %v1013_v6 = vpop.f32.mrf.mxu0  ;;  %v1022_v59 = vpop.f32.mrf.mxu1 }
 0x2a8   : > { %v805_v7 = vmax.f32 %v789_v63, 0.0  ;;  %v1014_v9 = vadd.f32 %v1013_v6, %v1012_v3  ;;  %v1023_v10 = vadd.f32 %v1022_v59, %v1021_v4  ;;  %v802_v16 = vmax.f32 %v778_v8, 0.0 }
 0x2a9   : > { %v1024_v11 = vpop.f32.mrf.mxu1 }
 0x2aa   : > { %v977_v12 = vpack.c.bf16 %v805_v7, %v804_v5  ;;  %v781_v2 = vadd.f32 %v1014_v9, %v928_v44  ;;  %v794_v18 = vadd.f32 %v1023_v10, %v928_v44 }
 0x2ab   : > { %v1025_v15 = vpop.f32.mrf.mxu1 }
 0x2ac   : > { %985 = vst [vmem:[%s1500_s23 + $0x10] sm:$0xff] %v977_v12   ;;  %v803_v17 = vmax.f32 %v781_v2, 0.0  ;;  %v1026_v13 = vadd.f32 %v1025_v15, %v1024_v11  ;;  %v806_v21 = vmax.f32 %v794_v18, 0.0 }
 0x2ae   : > { %v972_v19 = vpack.c.bf16 %v803_v17, %v802_v16  ;;  %v797_v20 = vadd.f32 %v1026_v13, %v928_v44 }
 0x2b0   : > { %984 = vst [vmem:[%s1500_s23 + $0x8] sm:$0xff] %v972_v19   ;;  %v807_v14 = vmax.f32 %v797_v20, 0.0 }
 0x2b2   : > { %v982_v22 = vpack.c.bf16 %v807_v14, %v806_v21 }
 0x2b4   : > { %986 = vst [vmem:[%s1500_s23 + $0x18] sm:$0xff] %v982_v22  }
 0x2b5 PF: > { %s15_s18 = sadd.s32 1, %s1124_s18  }
 0x2b6   : > { %p12_p5 = scmp.ge.s32.totalorder %s15_s18, 6  }
 0x2b8   :  { %14 = sbr.rel (!%p12_p5) target bundleno = 1 (0x1), region = 73 }

// kernel: gat_forward.8
= control target key start
LH: loop header
LB: loop body
LE: loop exit
PB: predicated region body
PF: predicated region fallthrough
CT: control target
= control target key end

     0   :  { %s870_s21 = smov 0   ;;  %s963_s0 = inlined_call_operand.vmem [shape: bf16[256,128], index: 0, kind: input, shape index: {}]   ;;  %s964_s1 = inlined_call_operand.vmem [shape: bf16[128,128], index: 1, kind: input, shape index: {}]   ;;  %s965_s2 = inlined_call_operand.vmem [shape: f32[1,128], index: 2, kind: input, shape index: {}]   ;;  %s966_s3 = inlined_call_operand.vmem [shape: f32[1,128], index: 3, kind: input, shape index: {}]   ;;  %s967_s4 = inlined_call_operand.vmem [shape: bf16[256,128], index: 4, kind: output, shape index: {0}]   ;;  %s968_s5 = inlined_call_operand.vmem [shape: f32[256,1], index: 5, kind: output, shape index: {1}]   ;;  %s969_s6 = inlined_call_operand.vmem [shape: f32[256,1], index: 6, kind: output, shape index: {2}]  }
   0x1 LB: > { %s687_s22 = sadd.s32 4294967295, %s833_s21   ;;  %p691_p0 = scmp.ge.s32.totalorder %s833_s21, 1  ;;  %s833_s21 = sphi %s870_s21, %s17_s21  }
   0x2   : > { %p218_p1 = scmp.lt.s32.totalorder %s833_s21, 5 }
   0x4   : > { %p219_p2 = pnand %p691_p0, %p218_p1 }
   0x5   : > { %s692_s25 = sshll.u32 (!%p219_p2), %s687_s22, 3 }
   0x6   : > { %222 = sbr.rel (%p219_p2) target bundleno = 406 (0x196), region = 36  ;;  %p259_p3 = scmp.lt.s32.totalorder (!%p219_p2), %s692_s25, 31 }
   0xb   : > { %v815_v0 = vld [vmem:[%s964_s1 + $0x38] sm:$0xff]   ;;  %v816_v1 = vld [vmem:[%s964_s1 + $0x30] sm:$0xff]   ;;  %s971_s25 = smov (!%p259_p3, %s692_s25), 31  ;;  %v817_v2 = vld [vmem:[%s964_s1 + $0x28] sm:$0xff]   ;;  %vm515_vm0 = vcmask 7168  }
   0xc   : > { %767 = vmatprep.subr.bf16.mxu0 %v815_v0  ;;  %791 = vmatprep.subr.bf16.mxu1 %v815_v0  ;;  %s693_s30 = sshll.u32 %s971_s25, 2  ;;  %v818_v3 = vld [vmem:[%s964_s1 + $0x20] sm:$0xff]   ;;  %v819_v6 = vld [vmem:[%s964_s1 + $0x18] sm:$0xff]   ;;  %v820_v7 = vld [vmem:[%s964_s1 + $0x10] sm:$0xff]   ;;  %s697_s29 = sshll.u32 %s971_s25, 3 }
   0xd   : > { %768 = vmatpush3.bf16.msra.mxu0 %v815_v0  ;;  %799 = vmatpush3.bf16.msra.mxu1 %v815_v0  ;;  %s895_s9 = scalar_lea.vmem %s963_s0, %s693_s30  ;;  %v821_v8 = vld [vmem:[%s964_s1 + $0x8] sm:$0xff]   ;;  %v822_v9 = vld [vmem:[%s964_s1] sm:$0xff]   ;;  %s268_s28 = scalar_lea.vmem %s967_s4, %s693_s30 }
   0xe   : > { %769 = vmatprep.subr.bf16.mxu0 %v816_v1  ;;  %792 = vmatprep.subr.bf16.mxu1 %v816_v1  ;;  %v823_v4 = vld [vmem:[%s895_s9] sm:$0xff]   ;;  %v824_v5 = vld [vmem:[%s895_s9 + $0x10] sm:$0xff]   ;;  %v825_v10 = vld [vmem:[%s895_s9 + $0x8] sm:$0xff]   ;;  %s931_s8 = scalar_lea.vmem %s968_s5, %s697_s29  ;;  %s280_s10 = scalar_lea.vmem %s969_s6, %s697_s29 }
   0xf   : > { %783 = vmatprep.mubr.bf16.mxu0 %v823_v4  ;;  %787 = vmatprep.mubr.bf16.mxu1 %v824_v5  ;;  %v826_v11 = vld [vmem:[%s895_s9 + $0x18] sm:$0xff]   ;;  %v720_v12 = vld [vmem:[%s965_s2] ss:$0 sm:$0xff] }
  0x10   : > { %v721_v19 = vld [vmem:[%s966_s3] ss:$0 sm:$0xff] }
  0x11   : > { %770 = vmatpush3.bf16.msra.mxu0 %v816_v1  ;;  %800 = vmatpush3.bf16.msra.mxu1 %v816_v1 }
  0x12   : > { %771 = vmatprep.subr.bf16.mxu0 %v817_v2  ;;  %793 = vmatprep.subr.bf16.mxu1 %v817_v2 }
  0x15   : > { %772 = vmatpush3.bf16.msra.mxu0 %v817_v2  ;;  %801 = vmatpush3.bf16.msra.mxu1 %v817_v2 }
  0x16   : > { %773 = vmatprep.subr.bf16.mxu0 %v818_v3  ;;  %794 = vmatprep.subr.bf16.mxu1 %v818_v3 }
  0x19   : > { %774 = vmatpush3.bf16.msra.mxu0 %v818_v3  ;;  %802 = vmatpush3.bf16.msra.mxu1 %v818_v3 }
  0x1a   : > { %775 = vmatprep.subr.bf16.mxu0 %v819_v6  ;;  %795 = vmatprep.subr.bf16.mxu1 %v819_v6 }
  0x1d   : > { %776 = vmatpush3.bf16.msra.mxu0 %v819_v6  ;;  %803 = vmatpush3.bf16.msra.mxu1 %v819_v6 }
  0x1e   : > { %777 = vmatprep.subr.bf16.mxu0 %v820_v7  ;;  %796 = vmatprep.subr.bf16.mxu1 %v820_v7 }
  0x21   : > { %778 = vmatpush3.bf16.msra.mxu0 %v820_v7  ;;  %804 = vmatpush3.bf16.msra.mxu1 %v820_v7 }
  0x22   : > { %779 = vmatprep.subr.bf16.mxu0 %v821_v8  ;;  %797 = vmatprep.subr.bf16.mxu1 %v821_v8 }
  0x25   : > { %780 = vmatpush3.bf16.msra.mxu0 %v821_v8  ;;  %805 = vmatpush3.bf16.msra.mxu1 %v821_v8 }
  0x26   : > { %781 = vmatprep.subr.bf16.mxu0 %v822_v9  ;;  %798 = vmatprep.subr.bf16.mxu1 %v822_v9 }
  0x29   : > { %782 = vmatpush3.bf16.msra.mxu0 %v822_v9  ;;  %806 = vmatpush3.bf16.msra.mxu1 %v822_v9 }
  0x2c   : > { %784 = vmatmul.mubr.bf16.vlgmr.msra.gmra.mxu0 %v825_v10  ;;  %788 = vmatmul.mubr.bf16.vlgmr.msra.gmra.mxu1 %v826_v11 }
  0xec   : > { %v785_v13 = vpop.f32.mrf.mxu0  ;;  %v789_v14 = vpop.f32.mrf.mxu1 }
  0xed   : > { %v497_v15 = vmul.f32 %v789_v14, %v720_v12  ;;  %v493_v16 = vmul.f32 %v785_v13, %v720_v12  ;;  %v533_v24 = vmul.f32 %v785_v13, %v721_v19  ;;  %v537_v41 = vmul.f32 %v789_v14, %v721_v19 }
  0xee   : > { %v413_v17 = vpop.f32.mrf.mxu0  ;;  %v429_v18 = vpop.f32.mrf.mxu1 }
  0xef   : > { %511 = vadd.xlane.f32.xlu0 %v497_v15  ;;  %503 = vadd.xlane.f32.xlu1 %v493_v16  ;;  %v491_v30 = vmul.f32 %v720_v12, %v413_v17  ;;  %v495_v32 = vmul.f32 %v720_v12, %v429_v18  ;;  %v531_v34 = vmul.f32 %v721_v19, %v413_v17 }
  0xf0   : > { %v786_v20 = vpop.f32.mrf.mxu0  ;;  %v790_v21 = vpop.f32.mrf.mxu1  ;;  %v535_v36 = vmul.f32 %v721_v19, %v429_v18 }
  0xf1   : > { %v740_v22 = vpack.c.bf16 %v786_v20, %v785_v13  ;;  %v750_v23 = vpack.c.bf16 %v790_v21, %v789_v14  ;;  %v494_v25 = vmul.f32 %v786_v20, %v720_v12  ;;  %v498_v31 = vmul.f32 %v790_v21, %v720_v12 }
  0xf2   : > { %v416_v26 = vpop.f32.mrf.mxu0  ;;  %v432_v27 = vpop.f32.mrf.mxu1  ;;  %v534_v33 = vmul.f32 %v786_v20, %v721_v19  ;;  %v538_v40 = vmul.f32 %v790_v21, %v721_v19 }
  0xf3   : > { %752 = vst [vmem:[%s268_s28 + $0x8] sm:$0xff] %v740_v22   ;;  %754 = vst [vmem:[%s268_s28 + $0x18] sm:$0xff] %v750_v23   ;;  %v735_v28 = vpack.c.bf16 %v416_v26, %v413_v17  ;;  %v745_v29 = vpack.c.bf16 %v432_v27, %v429_v18  ;;  %543 = vadd.xlane.f32.xlu0 %v533_v24  ;;  %505 = vadd.xlane.f32.xlu1 %v494_v25 }
  0xf4   : > { %v496_v35 = vmul.f32 %v720_v12, %v432_v27  ;;  %v532_v37 = vmul.f32 %v721_v19, %v416_v26  ;;  %v536_v38 = vmul.f32 %v721_v19, %v432_v27  ;;  %v492_v39 = vmul.f32 %v720_v12, %v416_v26 }
  0xf5   : > { %736 = vst [vmem:[%s268_s28] sm:$0xff] %v735_v28   ;;  %753 = vst [vmem:[%s268_s28 + $0x10] sm:$0xff] %v745_v29  }
  0xf7   : > { %499 = vadd.xlane.f32.xlu0 %v491_v30  ;;  %513 = vadd.xlane.f32.xlu1 %v498_v31 }
  0xfb   : > { %507 = vadd.xlane.f32.xlu0 %v495_v32  ;;  %545 = vadd.xlane.f32.xlu1 %v534_v33 }
  0xff   : > { %539 = vadd.xlane.f32.xlu0 %v531_v34  ;;  %509 = vadd.xlane.f32.xlu1 %v496_v35 }
 0x103   : > { %547 = vadd.xlane.f32.xlu0 %v535_v36  ;;  %541 = vadd.xlane.f32.xlu1 %v532_v37 }
 0x107   : > { %549 = vadd.xlane.f32.xlu1 %v536_v38  ;;  %501 = vadd.xlane.f32.xlu0 %v492_v39 }
 0x10b   : > { %553 = vadd.xlane.f32.xlu1 %v538_v40  ;;  %551 = vadd.xlane.f32.xlu0 %v537_v41 }
 0x178   : > { %v512_v42 = vpop.xlane.xlu0 %511  ;;  %v504_v43 = vpop.xlane.xlu1 %503 }
 0x179   : > { %522 = vst.msk [vmem:[%s931_s8 + $0x30] sm:$0xff] %vm515_vm0, %v512_v42  ;;  %518 = vst.msk [vmem:[%s931_s8 + $0x10] sm:$0xff] %vm515_vm0, %v504_v43 }
 0x17c   : > { %v544_v44 = vpop.xlane.xlu0 %543  ;;  %v506_v45 = vpop.xlane.xlu1 %505 }
 0x17d   : > { %557 = vst.msk [vmem:[%s280_s10 + $0x10] sm:$0xff] %vm515_vm0, %v544_v44  ;;  %519 = vst.msk [vmem:[%s931_s8 + $0x18] sm:$0xff] %vm515_vm0, %v506_v45 }
 0x180   : > { %v500_v46 = vpop.xlane.xlu0 %499  ;;  %v514_v47 = vpop.xlane.xlu1 %513 }
 0x181   : > { %516 = vst.msk [vmem:[%s931_s8] sm:$0xff] %vm515_vm0, %v500_v46  ;;  %523 = vst.msk [vmem:[%s931_s8 + $0x38] sm:$0xff] %vm515_vm0, %v514_v47 }
 0x184   : > { %v508_v48 = vpop.xlane.xlu0 %507  ;;  %v546_v49 = vpop.xlane.xlu1 %545 }
 0x185   : > { %520 = vst.msk [vmem:[%s931_s8 + $0x20] sm:$0xff] %vm515_vm0, %v508_v48  ;;  %558 = vst.msk [vmem:[%s280_s10 + $0x18] sm:$0xff] %vm515_vm0, %v546_v49 }
 0x188   : > { %v540_v50 = vpop.xlane.xlu0 %539  ;;  %v510_v51 = vpop.xlane.xlu1 %509 }
 0x189   : > { %555 = vst.msk [vmem:[%s280_s10] sm:$0xff] %vm515_vm0, %v540_v50  ;;  %521 = vst.msk [vmem:[%s931_s8 + $0x28] sm:$0xff] %vm515_vm0, %v510_v51 }
 0x18c   : > { %v548_v52 = vpop.xlane.xlu0 %547  ;;  %v542_v53 = vpop.xlane.xlu1 %541 }
 0x18d   : > { %559 = vst.msk [vmem:[%s280_s10 + $0x20] sm:$0xff] %vm515_vm0, %v548_v52  ;;  %556 = vst.msk [vmem:[%s280_s10 + $0x8] sm:$0xff] %vm515_vm0, %v542_v53 }
 0x190   : > { %v550_v54 = vpop.xlane.xlu1 %549  ;;  %v502_v55 = vpop.xlane.xlu0 %501 }
 0x191   : > { %560 = vst.msk [vmem:[%s280_s10 + $0x28] sm:$0xff] %vm515_vm0, %v550_v54  ;;  %517 = vst.msk [vmem:[%s931_s8 + $0x8] sm:$0xff] %vm515_vm0, %v502_v55 }
 0x194   : > { %v554_v56 = vpop.xlane.xlu1 %553  ;;  %v552_v57 = vpop.xlane.xlu0 %551 }
 0x195   : > { %562 = vst.msk [vmem:[%s280_s10 + $0x38] sm:$0xff] %vm515_vm0, %v554_v56  ;;  %561 = vst.msk [vmem:[%s280_s10 + $0x30] sm:$0xff] %vm515_vm0, %v552_v57 }
 0x196 PF: > { %s17_s21 = sadd.s32 1, %s833_s21  }
 0x197   : > { %p14_p4 = scmp.ge.s32.totalorder %s17_s21, 6  }
 0x199   :  { %16 = sbr.rel (!%p14_p4) target bundleno = 1 (0x1), region = 90 }

</bundles_post_ra>
